<compile_context>
chip_gen: v7x
topology: tpu7x:2x2x1
jax: 0.10.0
libtpu: 0.0.40
codegen_flags: <defaults>
</compile_context>

<pallas_src>
import jax
import jax.numpy as jnp
from jax.experimental import pallas as pl
from jax.experimental.pallas import tpu as pltpu

INPUT_SIZE = 128
HIDDEN_SIZE = 8
B_PAD = 8  # pad batch to one sublane group


def lstm_kernel(xT_ref, w_ih_ref, w_hh_ref, b_ref, h0_ref, c0_ref,
                out_ref, hn_ref, cn_ref):
    T, H, B = out_ref.shape                       # out: (T, H, B_pad)

    # ---- Phase 1 (non-recurrent): hoisted input projection, one MXU GEMM --
    # (4H, I) @ (I, T*B) + b  ->  (4H, T*B); gate axis = sublane axis.
    x_proj = (jnp.dot(w_ih_ref[...], xT_ref[...],
                      preferred_element_type=jnp.float32)
              + b_ref[...])                       # (4H, T*B)

    w_hh = w_hh_ref[...]                          # (4H, H)
    # Hoist the h-independent W_hh column extracts out of the recurrence.
    w_cols = [w_hh[:, k:k + 1] for k in range(H)]  # each (4H, 1)

    h = h0_ref[...]                               # (H, B)
    c = c0_ref[...]                               # (H, B)

    # ---- Phase 2: serial recurrence, statically unrolled (T is small) -----
    for t in range(T):
        gates = x_proj[:, t * B:(t + 1) * B]      # (4H, B), static, off-chain

        # Recurrent term on the VPU: 8 independent broadcast products,
        # pairwise tree-summed (serial add depth 3 instead of 8).
        prods = [w_cols[k] * h[k:k + 1, :] for k in range(H)]   # (4H, B) each
        while len(prods) > 1:
            nxt = [prods[i] + prods[i + 1]
                   for i in range(0, len(prods) - 1, 2)]
            if len(prods) % 2:
                nxt.append(prods[-1])
            prods = nxt
        gates = gates + prods[0]                  # (4H, B)

        # Batched nonlinearities: 2 EUP dispatches on the full tile.
        sig = jax.nn.sigmoid(gates)               # (4H, B)
        tg = jnp.tanh(gates)                      # (4H, B)

        # Gate slices are whole sublane-group selections (offsets 0/8/16/24).
        i_g = sig[0 * H:1 * H, :]
        f_g = sig[1 * H:2 * H, :]
        g_g = tg[2 * H:3 * H, :]
        o_g = sig[3 * H:4 * H, :]

        c = f_g * c + i_g * g_g
        h = o_g * jnp.tanh(c)

        out_ref[t] = h.astype(out_ref.dtype)      # aligned (H, B) slab store

    # Final states written exactly once.
    hn_ref[...] = h.astype(hn_ref.dtype)
    cn_ref[...] = c.astype(cn_ref.dtype)


def my_lstm_forward(x, h0, c0, w_ih, w_hh, b_ih, b_hh):
    """x: (T, B, I); h0, c0: (1, B, H).
    w_ih: (4H, I), w_hh: (4H, H), b_ih/b_hh: (4H,)  -- PyTorch param layout."""
    T, B, I = x.shape
    H = w_hh.shape[1]
    pad = B_PAD - B
    assert pad >= 0

    # Flipped orientation: xT[i, t*B_PAD + b] = x[t, b, i]; pad batch with 0s.
    xT = jnp.transpose(x.astype(jnp.float32), (2, 0, 1))        # (I, T, B)
    if pad:
        xT = jnp.pad(xT, ((0, 0), (0, 0), (0, pad)))
    xT = xT.reshape(I, T * B_PAD)                                # (I, T*B_pad)

    h0p = jnp.transpose(h0[0].astype(jnp.float32))               # (H, B)
    c0p = jnp.transpose(c0[0].astype(jnp.float32))
    if pad:
        h0p = jnp.pad(h0p, ((0, 0), (0, pad)))                   # (H, B_pad)
        c0p = jnp.pad(c0p, ((0, 0), (0, pad)))

    w_ih_f = w_ih.astype(jnp.float32)                            # (4H, I)
    w_hh_f = w_hh.astype(jnp.float32)                            # (4H, H)
    b = (b_ih + b_hh).reshape(4 * H, 1).astype(jnp.float32)      # (4H, 1)

    vmem = pl.BlockSpec(memory_space=pltpu.MemorySpace.VMEM)     # fully resident

    out, hn, cn = pl.pallas_call(
        lstm_kernel,
        out_shape=(
            jax.ShapeDtypeStruct((T, H, B_PAD), jnp.float32),    # all timesteps
            jax.ShapeDtypeStruct((H, B_PAD), jnp.float32),       # h_n
            jax.ShapeDtypeStruct((H, B_PAD), jnp.float32),       # c_n
        ),
        in_specs=[vmem] * 6,
        out_specs=(vmem, vmem, vmem),
    )(xT, w_ih_f, w_hh_f, b, h0p, c0p)

    # Un-flip and drop padded batch columns in the wrapper.
    out = jnp.transpose(out, (0, 2, 1))[:, :B, :]                # (T, B, H)
    hn = jnp.transpose(hn)[:B][None]                             # (1, B, H)
    cn = jnp.transpose(cn)[:B][None]
    return out, (hn, cn)


def lstm_ref(x, h0, c0, w_ih, w_hh, b_ih, b_hh):
    """Pure-JAX reference matching torch.nn.LSTM semantics (gate order i,f,g,o)."""
    def step(carry, x_t):
        h, c = carry
        gates = x_t @ w_ih.T + h @ w_hh.T + b_ih + b_hh
        i, f, g, o = jnp.split(gates, 4, axis=-1)
        i = jax.nn.sigmoid(i)
        f = jax.nn.sigmoid(f)
        g = jnp.tanh(g)
        o = jax.nn.sigmoid(o)
        c = f * c + i * g
        h = o * jnp.tanh(c)
        return (h, c), h

    (hn, cn), ys = jax.lax.scan(step, (h0[0], c0[0]), x)
    return ys, (hn[None], cn[None])


if __name__ == "__main__":
    T, B, I, H = 8, 2, INPUT_SIZE, HIDDEN_SIZE
    key = jax.random.PRNGKey(0)
    kx, kh, kc, k1, k2, k3, k4 = jax.random.split(key, 7)

    # Deterministic parameter init (PyTorch uses U(-1/sqrt(H), 1/sqrt(H))).
    bound = 1.0 / jnp.sqrt(jnp.float32(H))
    w_ih = jax.random.uniform(k1, (4 * H, I), jnp.float32, -bound, bound)
    w_hh = jax.random.uniform(k2, (4 * H, H), jnp.float32, -bound, bound)
    b_ih = jax.random.uniform(k3, (4 * H,), jnp.float32, -bound, bound)
    b_hh = jax.random.uniform(k4, (4 * H,), jnp.float32, -bound, bound)

    x = jax.random.normal(kx, (T, B, I), jnp.float32)
    h0 = jax.random.normal(kh, (1, B, H), jnp.float32)
    c0 = jax.random.normal(kc, (1, B, H), jnp.float32)

    out, (hn, cn) = my_lstm_forward(x, h0, c0, w_ih, w_hh, b_ih, b_hh)
    jax.block_until_ready((out, hn, cn))

    # Correctness check against pure-JAX reference.
    out_r, (hn_r, cn_r) = lstm_ref(x, h0, c0, w_ih, w_hh, b_ih, b_hh)
    assert jnp.allclose(out, out_r, atol=1e-5, rtol=1e-5)
    assert jnp.allclose(hn, hn_r, atol=1e-5, rtol=1e-5)
    assert jnp.allclose(cn, cn_r, atol=1e-5, rtol=1e-5)

    print("KERNEL_OK")
</pallas_src>

<mosaic_0001>
module attributes {stable_mosaic.version = 11 : i64} {
  func.func @lstm_kernel(%arg0: memref<128x64xf32, #tpu.memory_space<vmem>>, %arg1: memref<32x128xf32, #tpu.memory_space<vmem>>, %arg2: memref<32x8xf32, #tpu.memory_space<vmem>>, %arg3: memref<32x1xf32, #tpu.memory_space<vmem>>, %arg4: memref<8x8xf32, #tpu.memory_space<vmem>>, %arg5: memref<8x8xf32, #tpu.memory_space<vmem>>, %arg6: memref<8x8x8xf32, #tpu.memory_space<vmem>>, %arg7: memref<8x8xf32, #tpu.memory_space<vmem>>, %arg8: memref<8x8xf32, #tpu.memory_space<vmem>>) attributes {dimension_semantics = [], scalar_prefetch = 0 : i64, scratch_operands = 0 : i64, tpu.core_type = #tpu.core_type<tc>} {
    %c0 = arith.constant 0 : index
    %c0_0 = arith.constant 0 : index
    %0 = vector.load %arg1[%c0, %c0_0] : memref<32x128xf32, #tpu.memory_space<vmem>>, vector<32x128xf32>
    %c0_1 = arith.constant 0 : index
    %c0_2 = arith.constant 0 : index
    %1 = vector.load %arg0[%c0_1, %c0_2] : memref<128x64xf32, #tpu.memory_space<vmem>>, vector<128x64xf32>
    %cst = arith.constant dense<0.000000e+00> : vector<32x64xf32>
    %2 = tpu.matmul %0, %1, %cst {dimension_numbers = #tpu.dot_dimension_numbers<[1], [0], [0], [1], [0, 0, 1, 1], [], []>} : vector<32x128xf32>, vector<128x64xf32>, vector<32x64xf32> -> vector<32x64xf32>
    %c0_3 = arith.constant 0 : index
    %c0_4 = arith.constant 0 : index
    %3 = vector.load %arg3[%c0_3, %c0_4] : memref<32x1xf32, #tpu.memory_space<vmem>>, vector<32x1xf32>
    %4 = vector.broadcast %3 : vector<32x1xf32> to vector<32x64xf32>
    %5 = arith.addf %2, %4 : vector<32x64xf32>
    %c0_5 = arith.constant 0 : index
    %c0_6 = arith.constant 0 : index
    %6 = vector.load %arg2[%c0_5, %c0_6] : memref<32x8xf32, #tpu.memory_space<vmem>>, vector<32x8xf32>
    %7 = vector.extract_strided_slice %6 {offsets = [0, 0], sizes = [32, 1], strides = [1, 1]} : vector<32x8xf32> to vector<32x1xf32>
    %8 = vector.extract_strided_slice %6 {offsets = [0, 1], sizes = [32, 1], strides = [1, 1]} : vector<32x8xf32> to vector<32x1xf32>
    %9 = vector.extract_strided_slice %6 {offsets = [0, 2], sizes = [32, 1], strides = [1, 1]} : vector<32x8xf32> to vector<32x1xf32>
    %10 = vector.extract_strided_slice %6 {offsets = [0, 3], sizes = [32, 1], strides = [1, 1]} : vector<32x8xf32> to vector<32x1xf32>
    %11 = vector.extract_strided_slice %6 {offsets = [0, 4], sizes = [32, 1], strides = [1, 1]} : vector<32x8xf32> to vector<32x1xf32>
    %12 = vector.extract_strided_slice %6 {offsets = [0, 5], sizes = [32, 1], strides = [1, 1]} : vector<32x8xf32> to vector<32x1xf32>
    %13 = vector.extract_strided_slice %6 {offsets = [0, 6], sizes = [32, 1], strides = [1, 1]} : vector<32x8xf32> to vector<32x1xf32>
    %14 = vector.extract_strided_slice %6 {offsets = [0, 7], sizes = [32, 1], strides = [1, 1]} : vector<32x8xf32> to vector<32x1xf32>
    %c0_7 = arith.constant 0 : index
    %c0_8 = arith.constant 0 : index
    %15 = vector.load %arg4[%c0_7, %c0_8] : memref<8x8xf32, #tpu.memory_space<vmem>>, vector<8x8xf32>
    %c0_9 = arith.constant 0 : index
    %c0_10 = arith.constant 0 : index
    %16 = vector.load %arg5[%c0_9, %c0_10] : memref<8x8xf32, #tpu.memory_space<vmem>>, vector<8x8xf32>
    %17 = vector.extract_strided_slice %5 {offsets = [0, 0], sizes = [32, 8], strides = [1, 1]} : vector<32x64xf32> to vector<32x8xf32>
    %18 = vector.extract_strided_slice %15 {offsets = [0, 0], sizes = [1, 8], strides = [1, 1]} : vector<8x8xf32> to vector<1x8xf32>
    %19 = vector.broadcast %7 : vector<32x1xf32> to vector<32x8xf32>
    %20 = vector.broadcast %18 : vector<1x8xf32> to vector<32x8xf32>
    %21 = arith.mulf %19, %20 : vector<32x8xf32>
    %22 = vector.extract_strided_slice %15 {offsets = [1, 0], sizes = [1, 8], strides = [1, 1]} : vector<8x8xf32> to vector<1x8xf32>
    %23 = vector.broadcast %8 : vector<32x1xf32> to vector<32x8xf32>
    %24 = vector.broadcast %22 : vector<1x8xf32> to vector<32x8xf32>
    %25 = arith.mulf %23, %24 : vector<32x8xf32>
    %26 = vector.extract_strided_slice %15 {offsets = [2, 0], sizes = [1, 8], strides = [1, 1]} : vector<8x8xf32> to vector<1x8xf32>
    %27 = vector.broadcast %9 : vector<32x1xf32> to vector<32x8xf32>
    %28 = vector.broadcast %26 : vector<1x8xf32> to vector<32x8xf32>
    %29 = arith.mulf %27, %28 : vector<32x8xf32>
    %30 = vector.extract_strided_slice %15 {offsets = [3, 0], sizes = [1, 8], strides = [1, 1]} : vector<8x8xf32> to vector<1x8xf32>
    %31 = vector.broadcast %10 : vector<32x1xf32> to vector<32x8xf32>
    %32 = vector.broadcast %30 : vector<1x8xf32> to vector<32x8xf32>
    %33 = arith.mulf %31, %32 : vector<32x8xf32>
    %34 = vector.extract_strided_slice %15 {offsets = [4, 0], sizes = [1, 8], strides = [1, 1]} : vector<8x8xf32> to vector<1x8xf32>
    %35 = vector.broadcast %11 : vector<32x1xf32> to vector<32x8xf32>
    %36 = vector.broadcast %34 : vector<1x8xf32> to vector<32x8xf32>
    %37 = arith.mulf %35, %36 : vector<32x8xf32>
    %38 = vector.extract_strided_slice %15 {offsets = [5, 0], sizes = [1, 8], strides = [1, 1]} : vector<8x8xf32> to vector<1x8xf32>
    %39 = vector.broadcast %12 : vector<32x1xf32> to vector<32x8xf32>
    %40 = vector.broadcast %38 : vector<1x8xf32> to vector<32x8xf32>
    %41 = arith.mulf %39, %40 : vector<32x8xf32>
    %42 = vector.extract_strided_slice %15 {offsets = [6, 0], sizes = [1, 8], strides = [1, 1]} : vector<8x8xf32> to vector<1x8xf32>
    %43 = vector.broadcast %13 : vector<32x1xf32> to vector<32x8xf32>
    %44 = vector.broadcast %42 : vector<1x8xf32> to vector<32x8xf32>
    %45 = arith.mulf %43, %44 : vector<32x8xf32>
    %46 = vector.extract_strided_slice %15 {offsets = [7, 0], sizes = [1, 8], strides = [1, 1]} : vector<8x8xf32> to vector<1x8xf32>
    %47 = vector.broadcast %14 : vector<32x1xf32> to vector<32x8xf32>
    %48 = vector.broadcast %46 : vector<1x8xf32> to vector<32x8xf32>
    %49 = arith.mulf %47, %48 : vector<32x8xf32>
    %50 = arith.addf %21, %25 : vector<32x8xf32>
    %51 = arith.addf %29, %33 : vector<32x8xf32>
    %52 = arith.addf %37, %41 : vector<32x8xf32>
    %53 = arith.addf %45, %49 : vector<32x8xf32>
    %54 = arith.addf %50, %51 : vector<32x8xf32>
    %55 = arith.addf %52, %53 : vector<32x8xf32>
    %56 = arith.addf %54, %55 : vector<32x8xf32>
    %57 = arith.addf %17, %56 : vector<32x8xf32>
    %58 = arith.negf %57 : vector<32x8xf32>
    %59 = math.exp %58 : vector<32x8xf32>
    %cst_11 = arith.constant 1.000000e+00 : f32
    %60 = vector.broadcast %cst_11 : f32 to vector<32x8xf32>
    %61 = arith.addf %60, %59 : vector<32x8xf32>
    %62 = arith.divf %60, %61 : vector<32x8xf32>
    %63 = math.tanh %57 : vector<32x8xf32>
    %64 = vector.extract_strided_slice %62 {offsets = [0, 0], sizes = [8, 8], strides = [1, 1]} : vector<32x8xf32> to vector<8x8xf32>
    %65 = vector.extract_strided_slice %62 {offsets = [8, 0], sizes = [8, 8], strides = [1, 1]} : vector<32x8xf32> to vector<8x8xf32>
    %66 = vector.extract_strided_slice %63 {offsets = [16, 0], sizes = [8, 8], strides = [1, 1]} : vector<32x8xf32> to vector<8x8xf32>
    %67 = vector.extract_strided_slice %62 {offsets = [24, 0], sizes = [8, 8], strides = [1, 1]} : vector<32x8xf32> to vector<8x8xf32>
    %68 = arith.mulf %65, %16 : vector<8x8xf32>
    %69 = arith.mulf %64, %66 : vector<8x8xf32>
    %70 = arith.addf %68, %69 : vector<8x8xf32>
    %71 = math.tanh %70 : vector<8x8xf32>
    %72 = arith.mulf %67, %71 : vector<8x8xf32>
    %c0_12 = arith.constant 0 : index
    %c0_13 = arith.constant 0 : index
    %c0_14 = arith.constant 0 : index
    %73 = vector.load %arg6[%c0_12, %c0_13, %c0_14] : memref<8x8x8xf32, #tpu.memory_space<vmem>>, vector<1x8x8xf32>
    %74 = vector.shape_cast %73 : vector<1x8x8xf32> to vector<8x8xf32>
    %75 = vector.shape_cast %72 : vector<8x8xf32> to vector<1x8x8xf32>
    tpu.vector_store %arg6[%c0_12, %c0_13, %c0_14], %75 {strides = array<i32>} : memref<8x8x8xf32, #tpu.memory_space<vmem>>, vector<1x8x8xf32>,
    %76 = vector.extract_strided_slice %5 {offsets = [0, 8], sizes = [32, 8], strides = [1, 1]} : vector<32x64xf32> to vector<32x8xf32>
    %77 = vector.extract_strided_slice %72 {offsets = [0, 0], sizes = [1, 8], strides = [1, 1]} : vector<8x8xf32> to vector<1x8xf32>
    %78 = vector.broadcast %7 : vector<32x1xf32> to vector<32x8xf32>
    %79 = vector.broadcast %77 : vector<1x8xf32> to vector<32x8xf32>
    %80 = arith.mulf %78, %79 : vector<32x8xf32>
    %81 = vector.extract_strided_slice %72 {offsets = [1, 0], sizes = [1, 8], strides = [1, 1]} : vector<8x8xf32> to vector<1x8xf32>
    %82 = vector.broadcast %8 : vector<32x1xf32> to vector<32x8xf32>
    %83 = vector.broadcast %81 : vector<1x8xf32> to vector<32x8xf32>
    %84 = arith.mulf %82, %83 : vector<32x8xf32>
    %85 = vector.extract_strided_slice %72 {offsets = [2, 0], sizes = [1, 8], strides = [1, 1]} : vector<8x8xf32> to vector<1x8xf32>
    %86 = vector.broadcast %9 : vector<32x1xf32> to vector<32x8xf32>
    %87 = vector.broadcast %85 : vector<1x8xf32> to vector<32x8xf32>
    %88 = arith.mulf %86, %87 : vector<32x8xf32>
    %89 = vector.extract_strided_slice %72 {offsets = [3, 0], sizes = [1, 8], strides = [1, 1]} : vector<8x8xf32> to vector<1x8xf32>
    %90 = vector.broadcast %10 : vector<32x1xf32> to vector<32x8xf32>
    %91 = vector.broadcast %89 : vector<1x8xf32> to vector<32x8xf32>
    %92 = arith.mulf %90, %91 : vector<32x8xf32>
    %93 = vector.extract_strided_slice %72 {offsets = [4, 0], sizes = [1, 8], strides = [1, 1]} : vector<8x8xf32> to vector<1x8xf32>
    %94 = vector.broadcast %11 : vector<32x1xf32> to vector<32x8xf32>
    %95 = vector.broadcast %93 : vector<1x8xf32> to vector<32x8xf32>
    %96 = arith.mulf %94, %95 : vector<32x8xf32>
    %97 = vector.extract_strided_slice %72 {offsets = [5, 0], sizes = [1, 8], strides = [1, 1]} : vector<8x8xf32> to vector<1x8xf32>
    %98 = vector.broadcast %12 : vector<32x1xf32> to vector<32x8xf32>
    %99 = vector.broadcast %97 : vector<1x8xf32> to vector<32x8xf32>
    %100 = arith.mulf %98, %99 : vector<32x8xf32>
    %101 = vector.extract_strided_slice %72 {offsets = [6, 0], sizes = [1, 8], strides = [1, 1]} : vector<8x8xf32> to vector<1x8xf32>
    %102 = vector.broadcast %13 : vector<32x1xf32> to vector<32x8xf32>
    %103 = vector.broadcast %101 : vector<1x8xf32> to vector<32x8xf32>
    %104 = arith.mulf %102, %103 : vector<32x8xf32>
    %105 = vector.extract_strided_slice %72 {offsets = [7, 0], sizes = [1, 8], strides = [1, 1]} : vector<8x8xf32> to vector<1x8xf32>
    %106 = vector.broadcast %14 : vector<32x1xf32> to vector<32x8xf32>
    %107 = vector.broadcast %105 : vector<1x8xf32> to vector<32x8xf32>
    %108 = arith.mulf %106, %107 : vector<32x8xf32>
    %109 = arith.addf %80, %84 : vector<32x8xf32>
    %110 = arith.addf %88, %92 : vector<32x8xf32>
    %111 = arith.addf %96, %100 : vector<32x8xf32>
    %112 = arith.addf %104, %108 : vector<32x8xf32>
    %113 = arith.addf %109, %110 : vector<32x8xf32>
    %114 = arith.addf %111, %112 : vector<32x8xf32>
    %115 = arith.addf %113, %114 : vector<32x8xf32>
    %116 = arith.addf %76, %115 : vector<32x8xf32>
    %117 = arith.negf %116 : vector<32x8xf32>
    %118 = math.exp %117 : vector<32x8xf32>
    %cst_15 = arith.constant 1.000000e+00 : f32
    %119 = vector.broadcast %cst_15 : f32 to vector<32x8xf32>
    %120 = arith.addf %119, %118 : vector<32x8xf32>
    %121 = arith.divf %119, %120 : vector<32x8xf32>
    %122 = math.tanh %116 : vector<32x8xf32>
    %123 = vector.extract_strided_slice %121 {offsets = [0, 0], sizes = [8, 8], strides = [1, 1]} : vector<32x8xf32> to vector<8x8xf32>
    %124 = vector.extract_strided_slice %121 {offsets = [8, 0], sizes = [8, 8], strides = [1, 1]} : vector<32x8xf32> to vector<8x8xf32>
    %125 = vector.extract_strided_slice %122 {offsets = [16, 0], sizes = [8, 8], strides = [1, 1]} : vector<32x8xf32> to vector<8x8xf32>
    %126 = vector.extract_strided_slice %121 {offsets = [24, 0], sizes = [8, 8], strides = [1, 1]} : vector<32x8xf32> to vector<8x8xf32>
    %127 = arith.mulf %124, %70 : vector<8x8xf32>
    %128 = arith.mulf %123, %125 : vector<8x8xf32>
    %129 = arith.addf %127, %128 : vector<8x8xf32>
    %130 = math.tanh %129 : vector<8x8xf32>
    %131 = arith.mulf %126, %130 : vector<8x8xf32>
    %c1 = arith.constant 1 : index
    %c0_16 = arith.constant 0 : index
    %c0_17 = arith.constant 0 : index
    %132 = vector.load %arg6[%c1, %c0_16, %c0_17] : memref<8x8x8xf32, #tpu.memory_space<vmem>>, vector<1x8x8xf32>
    %133 = vector.shape_cast %132 : vector<1x8x8xf32> to vector<8x8xf32>
    %134 = vector.shape_cast %131 : vector<8x8xf32> to vector<1x8x8xf32>
    tpu.vector_store %arg6[%c1, %c0_16, %c0_17], %134 {strides = array<i32>} : memref<8x8x8xf32, #tpu.memory_space<vmem>>, vector<1x8x8xf32>,
    %135 = vector.extract_strided_slice %5 {offsets = [0, 16], sizes = [32, 8], strides = [1, 1]} : vector<32x64xf32> to vector<32x8xf32>
    %136 = vector.extract_strided_slice %131 {offsets = [0, 0], sizes = [1, 8], strides = [1, 1]} : vector<8x8xf32> to vector<1x8xf32>
    %137 = vector.broadcast %7 : vector<32x1xf32> to vector<32x8xf32>
    %138 = vector.broadcast %136 : vector<1x8xf32> to vector<32x8xf32>
    %139 = arith.mulf %137, %138 : vector<32x8xf32>
    %140 = vector.extract_strided_slice %131 {offsets = [1, 0], sizes = [1, 8], strides = [1, 1]} : vector<8x8xf32> to vector<1x8xf32>
    %141 = vector.broadcast %8 : vector<32x1xf32> to vector<32x8xf32>
    %142 = vector.broadcast %140 : vector<1x8xf32> to vector<32x8xf32>
    %143 = arith.mulf %141, %142 : vector<32x8xf32>
    %144 = vector.extract_strided_slice %131 {offsets = [2, 0], sizes = [1, 8], strides = [1, 1]} : vector<8x8xf32> to vector<1x8xf32>
    %145 = vector.broadcast %9 : vector<32x1xf32> to vector<32x8xf32>
    %146 = vector.broadcast %144 : vector<1x8xf32> to vector<32x8xf32>
    %147 = arith.mulf %145, %146 : vector<32x8xf32>
    %148 = vector.extract_strided_slice %131 {offsets = [3, 0], sizes = [1, 8], strides = [1, 1]} : vector<8x8xf32> to vector<1x8xf32>
    %149 = vector.broadcast %10 : vector<32x1xf32> to vector<32x8xf32>
    %150 = vector.broadcast %148 : vector<1x8xf32> to vector<32x8xf32>
    %151 = arith.mulf %149, %150 : vector<32x8xf32>
    %152 = vector.extract_strided_slice %131 {offsets = [4, 0], sizes = [1, 8], strides = [1, 1]} : vector<8x8xf32> to vector<1x8xf32>
    %153 = vector.broadcast %11 : vector<32x1xf32> to vector<32x8xf32>
    %154 = vector.broadcast %152 : vector<1x8xf32> to vector<32x8xf32>
    %155 = arith.mulf %153, %154 : vector<32x8xf32>
    %156 = vector.extract_strided_slice %131 {offsets = [5, 0], sizes = [1, 8], strides = [1, 1]} : vector<8x8xf32> to vector<1x8xf32>
    %157 = vector.broadcast %12 : vector<32x1xf32> to vector<32x8xf32>
    %158 = vector.broadcast %156 : vector<1x8xf32> to vector<32x8xf32>
    %159 = arith.mulf %157, %158 : vector<32x8xf32>
    %160 = vector.extract_strided_slice %131 {offsets = [6, 0], sizes = [1, 8], strides = [1, 1]} : vector<8x8xf32> to vector<1x8xf32>
    %161 = vector.broadcast %13 : vector<32x1xf32> to vector<32x8xf32>
    %162 = vector.broadcast %160 : vector<1x8xf32> to vector<32x8xf32>
    %163 = arith.mulf %161, %162 : vector<32x8xf32>
    %164 = vector.extract_strided_slice %131 {offsets = [7, 0], sizes = [1, 8], strides = [1, 1]} : vector<8x8xf32> to vector<1x8xf32>
    %165 = vector.broadcast %14 : vector<32x1xf32> to vector<32x8xf32>
    %166 = vector.broadcast %164 : vector<1x8xf32> to vector<32x8xf32>
    %167 = arith.mulf %165, %166 : vector<32x8xf32>
    %168 = arith.addf %139, %143 : vector<32x8xf32>
    %169 = arith.addf %147, %151 : vector<32x8xf32>
    %170 = arith.addf %155, %159 : vector<32x8xf32>
    %171 = arith.addf %163, %167 : vector<32x8xf32>
    %172 = arith.addf %168, %169 : vector<32x8xf32>
    %173 = arith.addf %170, %171 : vector<32x8xf32>
    %174 = arith.addf %172, %173 : vector<32x8xf32>
    %175 = arith.addf %135, %174 : vector<32x8xf32>
    %176 = arith.negf %175 : vector<32x8xf32>
    %177 = math.exp %176 : vector<32x8xf32>
    %cst_18 = arith.constant 1.000000e+00 : f32
    %178 = vector.broadcast %cst_18 : f32 to vector<32x8xf32>
    %179 = arith.addf %178, %177 : vector<32x8xf32>
    %180 = arith.divf %178, %179 : vector<32x8xf32>
    %181 = math.tanh %175 : vector<32x8xf32>
    %182 = vector.extract_strided_slice %180 {offsets = [0, 0], sizes = [8, 8], strides = [1, 1]} : vector<32x8xf32> to vector<8x8xf32>
    %183 = vector.extract_strided_slice %180 {offsets = [8, 0], sizes = [8, 8], strides = [1, 1]} : vector<32x8xf32> to vector<8x8xf32>
    %184 = vector.extract_strided_slice %181 {offsets = [16, 0], sizes = [8, 8], strides = [1, 1]} : vector<32x8xf32> to vector<8x8xf32>
    %185 = vector.extract_strided_slice %180 {offsets = [24, 0], sizes = [8, 8], strides = [1, 1]} : vector<32x8xf32> to vector<8x8xf32>
    %186 = arith.mulf %183, %129 : vector<8x8xf32>
    %187 = arith.mulf %182, %184 : vector<8x8xf32>
    %188 = arith.addf %186, %187 : vector<8x8xf32>
    %189 = math.tanh %188 : vector<8x8xf32>
    %190 = arith.mulf %185, %189 : vector<8x8xf32>
    %c2 = arith.constant 2 : index
    %c0_19 = arith.constant 0 : index
    %c0_20 = arith.constant 0 : index
    %191 = vector.load %arg6[%c2, %c0_19, %c0_20] : memref<8x8x8xf32, #tpu.memory_space<vmem>>, vector<1x8x8xf32>
    %192 = vector.shape_cast %191 : vector<1x8x8xf32> to vector<8x8xf32>
    %193 = vector.shape_cast %190 : vector<8x8xf32> to vector<1x8x8xf32>
    tpu.vector_store %arg6[%c2, %c0_19, %c0_20], %193 {strides = array<i32>} : memref<8x8x8xf32, #tpu.memory_space<vmem>>, vector<1x8x8xf32>,
    %194 = vector.extract_strided_slice %5 {offsets = [0, 24], sizes = [32, 8], strides = [1, 1]} : vector<32x64xf32> to vector<32x8xf32>
    %195 = vector.extract_strided_slice %190 {offsets = [0, 0], sizes = [1, 8], strides = [1, 1]} : vector<8x8xf32> to vector<1x8xf32>
    %196 = vector.broadcast %7 : vector<32x1xf32> to vector<32x8xf32>
    %197 = vector.broadcast %195 : vector<1x8xf32> to vector<32x8xf32>
    %198 = arith.mulf %196, %197 : vector<32x8xf32>
    %199 = vector.extract_strided_slice %190 {offsets = [1, 0], sizes = [1, 8], strides = [1, 1]} : vector<8x8xf32> to vector<1x8xf32>
    %200 = vector.broadcast %8 : vector<32x1xf32> to vector<32x8xf32>
    %201 = vector.broadcast %199 : vector<1x8xf32> to vector<32x8xf32>
    %202 = arith.mulf %200, %201 : vector<32x8xf32>
    %203 = vector.extract_strided_slice %190 {offsets = [2, 0], sizes = [1, 8], strides = [1, 1]} : vector<8x8xf32> to vector<1x8xf32>
    %204 = vector.broadcast %9 : vector<32x1xf32> to vector<32x8xf32>
    %205 = vector.broadcast %203 : vector<1x8xf32> to vector<32x8xf32>
    %206 = arith.mulf %204, %205 : vector<32x8xf32>
    %207 = vector.extract_strided_slice %190 {offsets = [3, 0], sizes = [1, 8], strides = [1, 1]} : vector<8x8xf32> to vector<1x8xf32>
    %208 = vector.broadcast %10 : vector<32x1xf32> to vector<32x8xf32>
    %209 = vector.broadcast %207 : vector<1x8xf32> to vector<32x8xf32>
    %210 = arith.mulf %208, %209 : vector<32x8xf32>
    %211 = vector.extract_strided_slice %190 {offsets = [4, 0], sizes = [1, 8], strides = [1, 1]} : vector<8x8xf32> to vector<1x8xf32>
    %212 = vector.broadcast %11 : vector<32x1xf32> to vector<32x8xf32>
    %213 = vector.broadcast %211 : vector<1x8xf32> to vector<32x8xf32>
    %214 = arith.mulf %212, %213 : vector<32x8xf32>
    %215 = vector.extract_strided_slice %190 {offsets = [5, 0], sizes = [1, 8], strides = [1, 1]} : vector<8x8xf32> to vector<1x8xf32>
    %216 = vector.broadcast %12 : vector<32x1xf32> to vector<32x8xf32>
    %217 = vector.broadcast %215 : vector<1x8xf32> to vector<32x8xf32>
    %218 = arith.mulf %216, %217 : vector<32x8xf32>
    %219 = vector.extract_strided_slice %190 {offsets = [6, 0], sizes = [1, 8], strides = [1, 1]} : vector<8x8xf32> to vector<1x8xf32>
    %220 = vector.broadcast %13 : vector<32x1xf32> to vector<32x8xf32>
    %221 = vector.broadcast %219 : vector<1x8xf32> to vector<32x8xf32>
    %222 = arith.mulf %220, %221 : vector<32x8xf32>
    %223 = vector.extract_strided_slice %190 {offsets = [7, 0], sizes = [1, 8], strides = [1, 1]} : vector<8x8xf32> to vector<1x8xf32>
    %224 = vector.broadcast %14 : vector<32x1xf32> to vector<32x8xf32>
    %225 = vector.broadcast %223 : vector<1x8xf32> to vector<32x8xf32>
    %226 = arith.mulf %224, %225 : vector<32x8xf32>
    %227 = arith.addf %198, %202 : vector<32x8xf32>
    %228 = arith.addf %206, %210 : vector<32x8xf32>
    %229 = arith.addf %214, %218 : vector<32x8xf32>
    %230 = arith.addf %222, %226 : vector<32x8xf32>
    %231 = arith.addf %227, %228 : vector<32x8xf32>
    %232 = arith.addf %229, %230 : vector<32x8xf32>
    %233 = arith.addf %231, %232 : vector<32x8xf32>
    %234 = arith.addf %194, %233 : vector<32x8xf32>
    %235 = arith.negf %234 : vector<32x8xf32>
    %236 = math.exp %235 : vector<32x8xf32>
    %cst_21 = arith.constant 1.000000e+00 : f32
    %237 = vector.broadcast %cst_21 : f32 to vector<32x8xf32>
    %238 = arith.addf %237, %236 : vector<32x8xf32>
    %239 = arith.divf %237, %238 : vector<32x8xf32>
    %240 = math.tanh %234 : vector<32x8xf32>
    %241 = vector.extract_strided_slice %239 {offsets = [0, 0], sizes = [8, 8], strides = [1, 1]} : vector<32x8xf32> to vector<8x8xf32>
    %242 = vector.extract_strided_slice %239 {offsets = [8, 0], sizes = [8, 8], strides = [1, 1]} : vector<32x8xf32> to vector<8x8xf32>
    %243 = vector.extract_strided_slice %240 {offsets = [16, 0], sizes = [8, 8], strides = [1, 1]} : vector<32x8xf32> to vector<8x8xf32>
    %244 = vector.extract_strided_slice %239 {offsets = [24, 0], sizes = [8, 8], strides = [1, 1]} : vector<32x8xf32> to vector<8x8xf32>
    %245 = arith.mulf %242, %188 : vector<8x8xf32>
    %246 = arith.mulf %241, %243 : vector<8x8xf32>
    %247 = arith.addf %245, %246 : vector<8x8xf32>
    %248 = math.tanh %247 : vector<8x8xf32>
    %249 = arith.mulf %244, %248 : vector<8x8xf32>
    %c3 = arith.constant 3 : index
    %c0_22 = arith.constant 0 : index
    %c0_23 = arith.constant 0 : index
    %250 = vector.load %arg6[%c3, %c0_22, %c0_23] : memref<8x8x8xf32, #tpu.memory_space<vmem>>, vector<1x8x8xf32>
    %251 = vector.shape_cast %250 : vector<1x8x8xf32> to vector<8x8xf32>
    %252 = vector.shape_cast %249 : vector<8x8xf32> to vector<1x8x8xf32>
    tpu.vector_store %arg6[%c3, %c0_22, %c0_23], %252 {strides = array<i32>} : memref<8x8x8xf32, #tpu.memory_space<vmem>>, vector<1x8x8xf32>,
    %253 = vector.extract_strided_slice %5 {offsets = [0, 32], sizes = [32, 8], strides = [1, 1]} : vector<32x64xf32> to vector<32x8xf32>
    %254 = vector.extract_strided_slice %249 {offsets = [0, 0], sizes = [1, 8], strides = [1, 1]} : vector<8x8xf32> to vector<1x8xf32>
    %255 = vector.broadcast %7 : vector<32x1xf32> to vector<32x8xf32>
    %256 = vector.broadcast %254 : vector<1x8xf32> to vector<32x8xf32>
    %257 = arith.mulf %255, %256 : vector<32x8xf32>
    %258 = vector.extract_strided_slice %249 {offsets = [1, 0], sizes = [1, 8], strides = [1, 1]} : vector<8x8xf32> to vector<1x8xf32>
    %259 = vector.broadcast %8 : vector<32x1xf32> to vector<32x8xf32>
    %260 = vector.broadcast %258 : vector<1x8xf32> to vector<32x8xf32>
    %261 = arith.mulf %259, %260 : vector<32x8xf32>
    %262 = vector.extract_strided_slice %249 {offsets = [2, 0], sizes = [1, 8], strides = [1, 1]} : vector<8x8xf32> to vector<1x8xf32>
    %263 = vector.broadcast %9 : vector<32x1xf32> to vector<32x8xf32>
    %264 = vector.broadcast %262 : vector<1x8xf32> to vector<32x8xf32>
    %265 = arith.mulf %263, %264 : vector<32x8xf32>
    %266 = vector.extract_strided_slice %249 {offsets = [3, 0], sizes = [1, 8], strides = [1, 1]} : vector<8x8xf32> to vector<1x8xf32>
    %267 = vector.broadcast %10 : vector<32x1xf32> to vector<32x8xf32>
    %268 = vector.broadcast %266 : vector<1x8xf32> to vector<32x8xf32>
    %269 = arith.mulf %267, %268 : vector<32x8xf32>
    %270 = vector.extract_strided_slice %249 {offsets = [4, 0], sizes = [1, 8], strides = [1, 1]} : vector<8x8xf32> to vector<1x8xf32>
    %271 = vector.broadcast %11 : vector<32x1xf32> to vector<32x8xf32>
    %272 = vector.broadcast %270 : vector<1x8xf32> to vector<32x8xf32>
    %273 = arith.mulf %271, %272 : vector<32x8xf32>
    %274 = vector.extract_strided_slice %249 {offsets = [5, 0], sizes = [1, 8], strides = [1, 1]} : vector<8x8xf32> to vector<1x8xf32>
    %275 = vector.broadcast %12 : vector<32x1xf32> to vector<32x8xf32>
    %276 = vector.broadcast %274 : vector<1x8xf32> to vector<32x8xf32>
    %277 = arith.mulf %275, %276 : vector<32x8xf32>
    %278 = vector.extract_strided_slice %249 {offsets = [6, 0], sizes = [1, 8], strides = [1, 1]} : vector<8x8xf32> to vector<1x8xf32>
    %279 = vector.broadcast %13 : vector<32x1xf32> to vector<32x8xf32>
    %280 = vector.broadcast %278 : vector<1x8xf32> to vector<32x8xf32>
    %281 = arith.mulf %279, %280 : vector<32x8xf32>
    %282 = vector.extract_strided_slice %249 {offsets = [7, 0], sizes = [1, 8], strides = [1, 1]} : vector<8x8xf32> to vector<1x8xf32>
    %283 = vector.broadcast %14 : vector<32x1xf32> to vector<32x8xf32>
    %284 = vector.broadcast %282 : vector<1x8xf32> to vector<32x8xf32>
    %285 = arith.mulf %283, %284 : vector<32x8xf32>
    %286 = arith.addf %257, %261 : vector<32x8xf32>
    %287 = arith.addf %265, %269 : vector<32x8xf32>
    %288 = arith.addf %273, %277 : vector<32x8xf32>
    %289 = arith.addf %281, %285 : vector<32x8xf32>
    %290 = arith.addf %286, %287 : vector<32x8xf32>
    %291 = arith.addf %288, %289 : vector<32x8xf32>
    %292 = arith.addf %290, %291 : vector<32x8xf32>
    %293 = arith.addf %253, %292 : vector<32x8xf32>
    %294 = arith.negf %293 : vector<32x8xf32>
    %295 = math.exp %294 : vector<32x8xf32>
    %cst_24 = arith.constant 1.000000e+00 : f32
    %296 = vector.broadcast %cst_24 : f32 to vector<32x8xf32>
    %297 = arith.addf %296, %295 : vector<32x8xf32>
    %298 = arith.divf %296, %297 : vector<32x8xf32>
    %299 = math.tanh %293 : vector<32x8xf32>
    %300 = vector.extract_strided_slice %298 {offsets = [0, 0], sizes = [8, 8], strides = [1, 1]} : vector<32x8xf32> to vector<8x8xf32>
    %301 = vector.extract_strided_slice %298 {offsets = [8, 0], sizes = [8, 8], strides = [1, 1]} : vector<32x8xf32> to vector<8x8xf32>
    %302 = vector.extract_strided_slice %299 {offsets = [16, 0], sizes = [8, 8], strides = [1, 1]} : vector<32x8xf32> to vector<8x8xf32>
    %303 = vector.extract_strided_slice %298 {offsets = [24, 0], sizes = [8, 8], strides = [1, 1]} : vector<32x8xf32> to vector<8x8xf32>
    %304 = arith.mulf %301, %247 : vector<8x8xf32>
    %305 = arith.mulf %300, %302 : vector<8x8xf32>
    %306 = arith.addf %304, %305 : vector<8x8xf32>
    %307 = math.tanh %306 : vector<8x8xf32>
    %308 = arith.mulf %303, %307 : vector<8x8xf32>
    %c4 = arith.constant 4 : index
    %c0_25 = arith.constant 0 : index
    %c0_26 = arith.constant 0 : index
    %309 = vector.load %arg6[%c4, %c0_25, %c0_26] : memref<8x8x8xf32, #tpu.memory_space<vmem>>, vector<1x8x8xf32>
    %310 = vector.shape_cast %309 : vector<1x8x8xf32> to vector<8x8xf32>
    %311 = vector.shape_cast %308 : vector<8x8xf32> to vector<1x8x8xf32>
    tpu.vector_store %arg6[%c4, %c0_25, %c0_26], %311 {strides = array<i32>} : memref<8x8x8xf32, #tpu.memory_space<vmem>>, vector<1x8x8xf32>,
    %312 = vector.extract_strided_slice %5 {offsets = [0, 40], sizes = [32, 8], strides = [1, 1]} : vector<32x64xf32> to vector<32x8xf32>
    %313 = vector.extract_strided_slice %308 {offsets = [0, 0], sizes = [1, 8], strides = [1, 1]} : vector<8x8xf32> to vector<1x8xf32>
    %314 = vector.broadcast %7 : vector<32x1xf32> to vector<32x8xf32>
    %315 = vector.broadcast %313 : vector<1x8xf32> to vector<32x8xf32>
    %316 = arith.mulf %314, %315 : vector<32x8xf32>
    %317 = vector.extract_strided_slice %308 {offsets = [1, 0], sizes = [1, 8], strides = [1, 1]} : vector<8x8xf32> to vector<1x8xf32>
    %318 = vector.broadcast %8 : vector<32x1xf32> to vector<32x8xf32>
    %319 = vector.broadcast %317 : vector<1x8xf32> to vector<32x8xf32>
    %320 = arith.mulf %318, %319 : vector<32x8xf32>
    %321 = vector.extract_strided_slice %308 {offsets = [2, 0], sizes = [1, 8], strides = [1, 1]} : vector<8x8xf32> to vector<1x8xf32>
    %322 = vector.broadcast %9 : vector<32x1xf32> to vector<32x8xf32>
    %323 = vector.broadcast %321 : vector<1x8xf32> to vector<32x8xf32>
    %324 = arith.mulf %322, %323 : vector<32x8xf32>
    %325 = vector.extract_strided_slice %308 {offsets = [3, 0], sizes = [1, 8], strides = [1, 1]} : vector<8x8xf32> to vector<1x8xf32>
    %326 = vector.broadcast %10 : vector<32x1xf32> to vector<32x8xf32>
    %327 = vector.broadcast %325 : vector<1x8xf32> to vector<32x8xf32>
    %328 = arith.mulf %326, %327 : vector<32x8xf32>
    %329 = vector.extract_strided_slice %308 {offsets = [4, 0], sizes = [1, 8], strides = [1, 1]} : vector<8x8xf32> to vector<1x8xf32>
    %330 = vector.broadcast %11 : vector<32x1xf32> to vector<32x8xf32>
    %331 = vector.broadcast %329 : vector<1x8xf32> to vector<32x8xf32>
    %332 = arith.mulf %330, %331 : vector<32x8xf32>
    %333 = vector.extract_strided_slice %308 {offsets = [5, 0], sizes = [1, 8], strides = [1, 1]} : vector<8x8xf32> to vector<1x8xf32>
    %334 = vector.broadcast %12 : vector<32x1xf32> to vector<32x8xf32>
    %335 = vector.broadcast %333 : vector<1x8xf32> to vector<32x8xf32>
    %336 = arith.mulf %334, %335 : vector<32x8xf32>
    %337 = vector.extract_strided_slice %308 {offsets = [6, 0], sizes = [1, 8], strides = [1, 1]} : vector<8x8xf32> to vector<1x8xf32>
    %338 = vector.broadcast %13 : vector<32x1xf32> to vector<32x8xf32>
    %339 = vector.broadcast %337 : vector<1x8xf32> to vector<32x8xf32>
    %340 = arith.mulf %338, %339 : vector<32x8xf32>
    %341 = vector.extract_strided_slice %308 {offsets = [7, 0], sizes = [1, 8], strides = [1, 1]} : vector<8x8xf32> to vector<1x8xf32>
    %342 = vector.broadcast %14 : vector<32x1xf32> to vector<32x8xf32>
    %343 = vector.broadcast %341 : vector<1x8xf32> to vector<32x8xf32>
    %344 = arith.mulf %342, %343 : vector<32x8xf32>
    %345 = arith.addf %316, %320 : vector<32x8xf32>
    %346 = arith.addf %324, %328 : vector<32x8xf32>
    %347 = arith.addf %332, %336 : vector<32x8xf32>
    %348 = arith.addf %340, %344 : vector<32x8xf32>
    %349 = arith.addf %345, %346 : vector<32x8xf32>
    %350 = arith.addf %347, %348 : vector<32x8xf32>
    %351 = arith.addf %349, %350 : vector<32x8xf32>
    %352 = arith.addf %312, %351 : vector<32x8xf32>
    %353 = arith.negf %352 : vector<32x8xf32>
    %354 = math.exp %353 : vector<32x8xf32>
    %cst_27 = arith.constant 1.000000e+00 : f32
    %355 = vector.broadcast %cst_27 : f32 to vector<32x8xf32>
    %356 = arith.addf %355, %354 : vector<32x8xf32>
    %357 = arith.divf %355, %356 : vector<32x8xf32>
    %358 = math.tanh %352 : vector<32x8xf32>
    %359 = vector.extract_strided_slice %357 {offsets = [0, 0], sizes = [8, 8], strides = [1, 1]} : vector<32x8xf32> to vector<8x8xf32>
    %360 = vector.extract_strided_slice %357 {offsets = [8, 0], sizes = [8, 8], strides = [1, 1]} : vector<32x8xf32> to vector<8x8xf32>
    %361 = vector.extract_strided_slice %358 {offsets = [16, 0], sizes = [8, 8], strides = [1, 1]} : vector<32x8xf32> to vector<8x8xf32>
    %362 = vector.extract_strided_slice %357 {offsets = [24, 0], sizes = [8, 8], strides = [1, 1]} : vector<32x8xf32> to vector<8x8xf32>
    %363 = arith.mulf %360, %306 : vector<8x8xf32>
    %364 = arith.mulf %359, %361 : vector<8x8xf32>
    %365 = arith.addf %363, %364 : vector<8x8xf32>
    %366 = math.tanh %365 : vector<8x8xf32>
    %367 = arith.mulf %362, %366 : vector<8x8xf32>
    %c5 = arith.constant 5 : index
    %c0_28 = arith.constant 0 : index
    %c0_29 = arith.constant 0 : index
    %368 = vector.load %arg6[%c5, %c0_28, %c0_29] : memref<8x8x8xf32, #tpu.memory_space<vmem>>, vector<1x8x8xf32>
    %369 = vector.shape_cast %368 : vector<1x8x8xf32> to vector<8x8xf32>
    %370 = vector.shape_cast %367 : vector<8x8xf32> to vector<1x8x8xf32>
    tpu.vector_store %arg6[%c5, %c0_28, %c0_29], %370 {strides = array<i32>} : memref<8x8x8xf32, #tpu.memory_space<vmem>>, vector<1x8x8xf32>,
    %371 = vector.extract_strided_slice %5 {offsets = [0, 48], sizes = [32, 8], strides = [1, 1]} : vector<32x64xf32> to vector<32x8xf32>
    %372 = vector.extract_strided_slice %367 {offsets = [0, 0], sizes = [1, 8], strides = [1, 1]} : vector<8x8xf32> to vector<1x8xf32>
    %373 = vector.broadcast %7 : vector<32x1xf32> to vector<32x8xf32>
    %374 = vector.broadcast %372 : vector<1x8xf32> to vector<32x8xf32>
    %375 = arith.mulf %373, %374 : vector<32x8xf32>
    %376 = vector.extract_strided_slice %367 {offsets = [1, 0], sizes = [1, 8], strides = [1, 1]} : vector<8x8xf32> to vector<1x8xf32>
    %377 = vector.broadcast %8 : vector<32x1xf32> to vector<32x8xf32>
    %378 = vector.broadcast %376 : vector<1x8xf32> to vector<32x8xf32>
    %379 = arith.mulf %377, %378 : vector<32x8xf32>
    %380 = vector.extract_strided_slice %367 {offsets = [2, 0], sizes = [1, 8], strides = [1, 1]} : vector<8x8xf32> to vector<1x8xf32>
    %381 = vector.broadcast %9 : vector<32x1xf32> to vector<32x8xf32>
    %382 = vector.broadcast %380 : vector<1x8xf32> to vector<32x8xf32>
    %383 = arith.mulf %381, %382 : vector<32x8xf32>
    %384 = vector.extract_strided_slice %367 {offsets = [3, 0], sizes = [1, 8], strides = [1, 1]} : vector<8x8xf32> to vector<1x8xf32>
    %385 = vector.broadcast %10 : vector<32x1xf32> to vector<32x8xf32>
    %386 = vector.broadcast %384 : vector<1x8xf32> to vector<32x8xf32>
    %387 = arith.mulf %385, %386 : vector<32x8xf32>
    %388 = vector.extract_strided_slice %367 {offsets = [4, 0], sizes = [1, 8], strides = [1, 1]} : vector<8x8xf32> to vector<1x8xf32>
    %389 = vector.broadcast %11 : vector<32x1xf32> to vector<32x8xf32>
    %390 = vector.broadcast %388 : vector<1x8xf32> to vector<32x8xf32>
    %391 = arith.mulf %389, %390 : vector<32x8xf32>
    %392 = vector.extract_strided_slice %367 {offsets = [5, 0], sizes = [1, 8], strides = [1, 1]} : vector<8x8xf32> to vector<1x8xf32>
    %393 = vector.broadcast %12 : vector<32x1xf32> to vector<32x8xf32>
    %394 = vector.broadcast %392 : vector<1x8xf32> to vector<32x8xf32>
    %395 = arith.mulf %393, %394 : vector<32x8xf32>
    %396 = vector.extract_strided_slice %367 {offsets = [6, 0], sizes = [1, 8], strides = [1, 1]} : vector<8x8xf32> to vector<1x8xf32>
    %397 = vector.broadcast %13 : vector<32x1xf32> to vector<32x8xf32>
    %398 = vector.broadcast %396 : vector<1x8xf32> to vector<32x8xf32>
    %399 = arith.mulf %397, %398 : vector<32x8xf32>
    %400 = vector.extract_strided_slice %367 {offsets = [7, 0], sizes = [1, 8], strides = [1, 1]} : vector<8x8xf32> to vector<1x8xf32>
    %401 = vector.broadcast %14 : vector<32x1xf32> to vector<32x8xf32>
    %402 = vector.broadcast %400 : vector<1x8xf32> to vector<32x8xf32>
    %403 = arith.mulf %401, %402 : vector<32x8xf32>
    %404 = arith.addf %375, %379 : vector<32x8xf32>
    %405 = arith.addf %383, %387 : vector<32x8xf32>
    %406 = arith.addf %391, %395 : vector<32x8xf32>
    %407 = arith.addf %399, %403 : vector<32x8xf32>
    %408 = arith.addf %404, %405 : vector<32x8xf32>
    %409 = arith.addf %406, %407 : vector<32x8xf32>
    %410 = arith.addf %408, %409 : vector<32x8xf32>
    %411 = arith.addf %371, %410 : vector<32x8xf32>
    %412 = arith.negf %411 : vector<32x8xf32>
    %413 = math.exp %412 : vector<32x8xf32>
    %cst_30 = arith.constant 1.000000e+00 : f32
    %414 = vector.broadcast %cst_30 : f32 to vector<32x8xf32>
    %415 = arith.addf %414, %413 : vector<32x8xf32>
    %416 = arith.divf %414, %415 : vector<32x8xf32>
    %417 = math.tanh %411 : vector<32x8xf32>
    %418 = vector.extract_strided_slice %416 {offsets = [0, 0], sizes = [8, 8], strides = [1, 1]} : vector<32x8xf32> to vector<8x8xf32>
    %419 = vector.extract_strided_slice %416 {offsets = [8, 0], sizes = [8, 8], strides = [1, 1]} : vector<32x8xf32> to vector<8x8xf32>
    %420 = vector.extract_strided_slice %417 {offsets = [16, 0], sizes = [8, 8], strides = [1, 1]} : vector<32x8xf32> to vector<8x8xf32>
    %421 = vector.extract_strided_slice %416 {offsets = [24, 0], sizes = [8, 8], strides = [1, 1]} : vector<32x8xf32> to vector<8x8xf32>
    %422 = arith.mulf %419, %365 : vector<8x8xf32>
    %423 = arith.mulf %418, %420 : vector<8x8xf32>
    %424 = arith.addf %422, %423 : vector<8x8xf32>
    %425 = math.tanh %424 : vector<8x8xf32>
    %426 = arith.mulf %421, %425 : vector<8x8xf32>
    %c6 = arith.constant 6 : index
    %c0_31 = arith.constant 0 : index
    %c0_32 = arith.constant 0 : index
    %427 = vector.load %arg6[%c6, %c0_31, %c0_32] : memref<8x8x8xf32, #tpu.memory_space<vmem>>, vector<1x8x8xf32>
    %428 = vector.shape_cast %427 : vector<1x8x8xf32> to vector<8x8xf32>
    %429 = vector.shape_cast %426 : vector<8x8xf32> to vector<1x8x8xf32>
    tpu.vector_store %arg6[%c6, %c0_31, %c0_32], %429 {strides = array<i32>} : memref<8x8x8xf32, #tpu.memory_space<vmem>>, vector<1x8x8xf32>,
    %430 = vector.extract_strided_slice %5 {offsets = [0, 56], sizes = [32, 8], strides = [1, 1]} : vector<32x64xf32> to vector<32x8xf32>
    %431 = vector.extract_strided_slice %426 {offsets = [0, 0], sizes = [1, 8], strides = [1, 1]} : vector<8x8xf32> to vector<1x8xf32>
    %432 = vector.broadcast %7 : vector<32x1xf32> to vector<32x8xf32>
    %433 = vector.broadcast %431 : vector<1x8xf32> to vector<32x8xf32>
    %434 = arith.mulf %432, %433 : vector<32x8xf32>
    %435 = vector.extract_strided_slice %426 {offsets = [1, 0], sizes = [1, 8], strides = [1, 1]} : vector<8x8xf32> to vector<1x8xf32>
    %436 = vector.broadcast %8 : vector<32x1xf32> to vector<32x8xf32>
    %437 = vector.broadcast %435 : vector<1x8xf32> to vector<32x8xf32>
    %438 = arith.mulf %436, %437 : vector<32x8xf32>
    %439 = vector.extract_strided_slice %426 {offsets = [2, 0], sizes = [1, 8], strides = [1, 1]} : vector<8x8xf32> to vector<1x8xf32>
    %440 = vector.broadcast %9 : vector<32x1xf32> to vector<32x8xf32>
    %441 = vector.broadcast %439 : vector<1x8xf32> to vector<32x8xf32>
    %442 = arith.mulf %440, %441 : vector<32x8xf32>
    %443 = vector.extract_strided_slice %426 {offsets = [3, 0], sizes = [1, 8], strides = [1, 1]} : vector<8x8xf32> to vector<1x8xf32>
    %444 = vector.broadcast %10 : vector<32x1xf32> to vector<32x8xf32>
    %445 = vector.broadcast %443 : vector<1x8xf32> to vector<32x8xf32>
    %446 = arith.mulf %444, %445 : vector<32x8xf32>
    %447 = vector.extract_strided_slice %426 {offsets = [4, 0], sizes = [1, 8], strides = [1, 1]} : vector<8x8xf32> to vector<1x8xf32>
    %448 = vector.broadcast %11 : vector<32x1xf32> to vector<32x8xf32>
    %449 = vector.broadcast %447 : vector<1x8xf32> to vector<32x8xf32>
    %450 = arith.mulf %448, %449 : vector<32x8xf32>
    %451 = vector.extract_strided_slice %426 {offsets = [5, 0], sizes = [1, 8], strides = [1, 1]} : vector<8x8xf32> to vector<1x8xf32>
    %452 = vector.broadcast %12 : vector<32x1xf32> to vector<32x8xf32>
    %453 = vector.broadcast %451 : vector<1x8xf32> to vector<32x8xf32>
    %454 = arith.mulf %452, %453 : vector<32x8xf32>
    %455 = vector.extract_strided_slice %426 {offsets = [6, 0], sizes = [1, 8], strides = [1, 1]} : vector<8x8xf32> to vector<1x8xf32>
    %456 = vector.broadcast %13 : vector<32x1xf32> to vector<32x8xf32>
    %457 = vector.broadcast %455 : vector<1x8xf32> to vector<32x8xf32>
    %458 = arith.mulf %456, %457 : vector<32x8xf32>
    %459 = vector.extract_strided_slice %426 {offsets = [7, 0], sizes = [1, 8], strides = [1, 1]} : vector<8x8xf32> to vector<1x8xf32>
    %460 = vector.broadcast %14 : vector<32x1xf32> to vector<32x8xf32>
    %461 = vector.broadcast %459 : vector<1x8xf32> to vector<32x8xf32>
    %462 = arith.mulf %460, %461 : vector<32x8xf32>
    %463 = arith.addf %434, %438 : vector<32x8xf32>
    %464 = arith.addf %442, %446 : vector<32x8xf32>
    %465 = arith.addf %450, %454 : vector<32x8xf32>
    %466 = arith.addf %458, %462 : vector<32x8xf32>
    %467 = arith.addf %463, %464 : vector<32x8xf32>
    %468 = arith.addf %465, %466 : vector<32x8xf32>
    %469 = arith.addf %467, %468 : vector<32x8xf32>
    %470 = arith.addf %430, %469 : vector<32x8xf32>
    %471 = arith.negf %470 : vector<32x8xf32>
    %472 = math.exp %471 : vector<32x8xf32>
    %cst_33 = arith.constant 1.000000e+00 : f32
    %473 = vector.broadcast %cst_33 : f32 to vector<32x8xf32>
    %474 = arith.addf %473, %472 : vector<32x8xf32>
    %475 = arith.divf %473, %474 : vector<32x8xf32>
    %476 = math.tanh %470 : vector<32x8xf32>
    %477 = vector.extract_strided_slice %475 {offsets = [0, 0], sizes = [8, 8], strides = [1, 1]} : vector<32x8xf32> to vector<8x8xf32>
    %478 = vector.extract_strided_slice %475 {offsets = [8, 0], sizes = [8, 8], strides = [1, 1]} : vector<32x8xf32> to vector<8x8xf32>
    %479 = vector.extract_strided_slice %476 {offsets = [16, 0], sizes = [8, 8], strides = [1, 1]} : vector<32x8xf32> to vector<8x8xf32>
    %480 = vector.extract_strided_slice %475 {offsets = [24, 0], sizes = [8, 8], strides = [1, 1]} : vector<32x8xf32> to vector<8x8xf32>
    %481 = arith.mulf %478, %424 : vector<8x8xf32>
    %482 = arith.mulf %477, %479 : vector<8x8xf32>
    %483 = arith.addf %481, %482 : vector<8x8xf32>
    %484 = math.tanh %483 : vector<8x8xf32>
    %485 = arith.mulf %480, %484 : vector<8x8xf32>
    %c7 = arith.constant 7 : index
    %c0_34 = arith.constant 0 : index
    %c0_35 = arith.constant 0 : index
    %486 = vector.load %arg6[%c7, %c0_34, %c0_35] : memref<8x8x8xf32, #tpu.memory_space<vmem>>, vector<1x8x8xf32>
    %487 = vector.shape_cast %486 : vector<1x8x8xf32> to vector<8x8xf32>
    %488 = vector.shape_cast %485 : vector<8x8xf32> to vector<1x8x8xf32>
    tpu.vector_store %arg6[%c7, %c0_34, %c0_35], %488 {strides = array<i32>} : memref<8x8x8xf32, #tpu.memory_space<vmem>>, vector<1x8x8xf32>,
    %c0_36 = arith.constant 0 : index
    %c0_37 = arith.constant 0 : index
    %489 = vector.load %arg7[%c0_36, %c0_37] : memref<8x8xf32, #tpu.memory_space<vmem>>, vector<8x8xf32>
    tpu.vector_store %arg7[%c0_36, %c0_37], %485 {strides = array<i32>} : memref<8x8xf32, #tpu.memory_space<vmem>>, vector<8x8xf32>,
    %c0_38 = arith.constant 0 : index
    %c0_39 = arith.constant 0 : index
    %490 = vector.load %arg8[%c0_38, %c0_39] : memref<8x8xf32, #tpu.memory_space<vmem>>, vector<8x8xf32>
    tpu.vector_store %arg8[%c0_38, %c0_39], %483 {strides = array<i32>} : memref<8x8xf32, #tpu.memory_space<vmem>>, vector<8x8xf32>,
    return
  }
}

</mosaic_0001>

<bundles_post_ra>
// kernel: tpu_custom_call.1
= control target key start
LH: loop header
LB: loop body
LE: loop exit
PB: predicated region body
PF: predicated region fallthrough
CT: control target
= control target key end

     0   :  { %14 = vsyncpa [#allocation3], 0  ;;  %v1861_v3 = vmov 2   ;;  %v1862_v4 = vmov 1   ;;  %v1863_v13 = vmov 5   ;;  %s2706_s0 = inlined_call_operand.vmem [shape: f32[128,64], index: 0, kind: input, shape index: {}]   ;;  %s2707_s1 = inlined_call_operand.vmem [shape: f32[32,128], index: 1, kind: input, shape index: {}]   ;;  %s2708_s2 = inlined_call_operand.vmem [shape: f32[32,8], index: 2, kind: input, shape index: {}]   ;;  %s2709_s3 = inlined_call_operand.vmem [shape: f32[32,1], index: 3, kind: input, shape index: {}]   ;;  %s2710_s4 = inlined_call_operand.vmem [shape: f32[8,8], index: 4, kind: input, shape index: {}]   ;;  %s2711_s5 = inlined_call_operand.vmem [shape: f32[8,8], index: 5, kind: input, shape index: {}]   ;;  %s2712_s6 = inlined_call_operand.hbm [shape: f32[8,8,8], index: 6, kind: output, shape index: {0}]   ;;  %s2713_s7 = inlined_call_operand.hbm [shape: f32[8,8], index: 7, kind: output, shape index: {1}]   ;;  %s2714_s8 = inlined_call_operand.hbm [shape: f32[8,8], index: 8, kind: output, shape index: {2}]  }
   0x1   :  { %v1929_v0 = vld [vmem:[%s2708_s2] sm:$0xff]  ;;  %v33_v2 = vld [vmem:[%s2706_s0 + $0x8] sm:$0xff]  ;;  %1639 = vset.pattern.permute.xlu0 %v1861_v3  ;;  %1638 = vset.pattern.permute.xlu1 %v1862_v4  ;;  %v34_v6 = vld [vmem:[%s2706_s0 + $0x10] sm:$0xff] }
   0x2   :  { %v32_v1 = vld [vmem:[%s2706_s0] sm:$0xff]  ;;  %v35_v7 = vld [vmem:[%s2706_s0 + $0x18] sm:$0xff]  ;;  %216 = vperm.xlu0 %1639, %v1929_v0   ;;  %192 = vperm.xlu1 %1638, %v1929_v0   ;;  %v37_v10 = vld [vmem:[%s2706_s0 + $0x28] sm:$0xff] }
   0x3   :  { %v1570_v5 = vpack.c.bf16 %v33_v2, %v32_v1  ;;  %v1574_v8 = vpack.c.bf16 %v35_v7, %v34_v6  ;;  %v36_v9 = vld [vmem:[%s2706_s0 + $0x20] sm:$0xff]  ;;  %v1956_v11 = vld [vmem:[%s2708_s2 + $0x8] sm:$0xff]  ;;  %v38_v14 = vld [vmem:[%s2706_s0 + $0x30] sm:$0xff] }
   0x4   :  { %v1578_v12 = vpack.c.bf16 %v37_v10, %v36_v9  ;;  %v39_v15 = vld [vmem:[%s2706_s0 + $0x38] sm:$0xff]  ;;  %v28_v16 = vld [vmem:[%s2707_s1] sm:$0xff]  ;;  %v30_v17 = vld [vmem:[%s2707_s1 + $0x10] sm:$0xff] }
   0x5   :  { %1571 = vmatprep.subr.bf16.mxu0 %v1570_v5  ;;  %1602 = vmatprep.subr.bf16.mxu1 %v1570_v5  ;;  %v1582_v18 = vpack.c.bf16 %v39_v15, %v38_v14 }
   0x6   :  { %1573 = vmatpush3.bf16.msra.mxu0 %v1570_v5  ;;  %1610 = vmatpush3.bf16.msra.mxu1 %v1570_v5 }
   0x7   :  { %1575 = vmatprep.subr.bf16.mxu0 %v1574_v8  ;;  %1603 = vmatprep.subr.bf16.mxu1 %v1574_v8 }
   0x8   :  { %1643 = vset.pattern.permute.xlu0 %v1863_v13  ;;  %196 = vperm.xlu1 %1638, %v1956_v11  }
   0x9   :  { %288 = vperm.xlu0 %1643, %v1929_v0   ;;  %1564 = vmatprep.mubr.f32.mxu0 %v28_v16 }
   0xa   :  { %1577 = vmatpush3.bf16.msra.mxu0 %v1574_v8  ;;  %1611 = vmatpush3.bf16.msra.mxu1 %v1574_v8 }
   0xb   :  { %1579 = vmatprep.subr.bf16.mxu0 %v1578_v12  ;;  %1604 = vmatprep.subr.bf16.mxu1 %v1578_v12 }
   0xc   :  { %15 = vsyncpa [#allocation5], 0  ;;  %1640 = vset.pattern.permute.xlu1 %v1861_v3  ;;  %1567 = vmatprep.mubr.f32.mxu1 %v30_v17  ;;  %v1864_v19 = vmov 6   ;;  %v40_v20 = vld [vmem:[%s2706_s0 + $0x40] sm:$0xff]  ;;  %v41_v21 = vld [vmem:[%s2706_s0 + $0x48] sm:$0xff]  ;;  %v1865_v23 = vmov 3   ;;  %v183_v6 = vlaneseq }
   0xd   :  { %1646 = vset.pattern.permute.xlu0 %v1864_v19  ;;  %220 = vperm.xlu1 %1640, %v1956_v11   ;;  %v1586_v22 = vpack.c.bf16 %v41_v21, %v40_v20  ;;  %v1866_v24 = vmov 0   ;;  %v42_v25 = vld [vmem:[%s2706_s0 + $0x50] sm:$0xff]  ;;  %v43_v26 = vld [vmem:[%s2706_s0 + $0x58] sm:$0xff]  ;;  %v1867_v28 = vmov 4   ;;  %v44_v29 = vld [vmem:[%s2706_s0 + $0x60] sm:$0xff]  ;;  %v1868_v39 = vmov 7  }
   0xe   :  { %316 = vperm.xlu0 %1646, %v1956_v11   ;;  %1581 = vmatpush3.bf16.msra.mxu0 %v1578_v12  ;;  %v1590_v27 = vpack.c.bf16 %v43_v26, %v42_v25  ;;  %v45_v30 = vld [vmem:[%s2706_s0 + $0x68] sm:$0xff]  ;;  %v48_v31 = vld [vmem:[%s2709_s3] sm:$0xff]  ;;  %v46_v33 = vld [vmem:[%s2706_s0 + $0x70] sm:$0xff]  ;;  %v184_v9 = vshrl.u32 %v183_v6, 7  ;;  %vm415_vm0 = vcmask 64512   ;;  %s1870_s16 = smov 112  }
   0xf   :  { %1612 = vmatpush3.bf16.msra.mxu1 %v1578_v12  ;;  %1583 = vmatprep.subr.bf16.mxu0 %v1582_v18  ;;  %v1594_v32 = vpack.c.bf16 %v45_v30, %v44_v29  ;;  %v47_v34 = vld [vmem:[%s2706_s0 + $0x78] sm:$0xff]  ;;  %v29_v37 = vld [vmem:[%s2707_s1 + $0x8] sm:$0xff]  ;;  %v159_v40 = vld [vmem:[%s2708_s2 + $0x10] sm:$0xff]  ;;  %s1871_s17 = smov 96   ;;  %s1872_s18 = smov 120  }
  0x10   :  { %1605 = vmatprep.subr.bf16.mxu1 %v1582_v18  ;;  %v160_v35 = vld [vmem:[%s2708_s2 + $0x18] sm:$0xff]  ;;  %v1598_v36 = vpack.c.bf16 %v47_v34, %v46_v33  ;;  %v49_v41 = vld [vmem:[%s2709_s3 + $0x8] sm:$0xff]  ;;  %v50_v42 = vld [vmem:[%s2709_s3 + $0x10] sm:$0xff]  ;;  %v2108_v10 = vsub.s32 2, %v184_v9  ;;  %v2117_v14 = vsub.s32 6, %v184_v9  ;;  %v2119_v15 = vsub.s32 4, %v184_v9 }
  0x11   :  { %1641 = vset.pattern.permute.xlu1 %v1865_v23  ;;  %v31_v38 = vld [vmem:[%s2707_s1 + $0x18] sm:$0xff]  ;;  %v161_v12 = vld [vmem:[%s2710_s4] sm:$0xff]  ;;  %v2121_v16 = vsub.s32 7, %v184_v9  ;;  %v2129_v20 = vsub.s32 3, %v184_v9  ;;  %s1873_s19 = smov 104   ;;  %s1874_s20 = smov 88  }
  0x12   :  { %240 = vperm.xlu1 %1641, %v1929_v0   ;;  %1647 = vset.pattern.permute.xlu0 %v1866_v24  ;;  %v51_v43 = vld [vmem:[%s2709_s3 + $0x18] sm:$0xff]  ;;  %v2132_v21 = vrot.slane %v161_v12, %v2108_v10  ;;  %v282_v25 = vrot.slane %v161_v12, %v2119_v15  ;;  %s1875_s21 = smov 72   ;;  %s1876_s22 = smov 80  }
  0x13   :  { %1585 = vmatpush3.bf16.msra.mxu0 %v1582_v18  ;;  %1613 = vmatpush3.bf16.msra.mxu1 %v1582_v18  ;;  %v354_v26 = vrot.slane %v161_v12, %v2121_v16  ;;  %s1877_s23 = smov [#allocation4]   ;;  %s1878_s25 = smov [#allocation6]  }
  0x14   :  { %165 = vperm.xlu0 %1647, %v1929_v0   ;;  %1587 = vmatprep.subr.bf16.mxu0 %v1586_v22  ;;  %s1463_s24 = sshll.u32 %s1877_s23, 4  ;;  %s1473_s26 = sshll.u32 %s1878_s25, 4  ;;  %s1464_s24 = int_to_ptr.vmem [resolvable:$true] %s1463_s24  ;;  %s2652_s26 = int_to_ptr.vmem [resolvable:$true] %s1473_s26 }
  0x15   :  { %1606 = vmatprep.subr.bf16.mxu1 %v1586_v22  ;;  %s1879_s0 = smov [#allocation2]   ;;  %s1791_s28 = scalar_lea.vmem %s1464_s24, 128 }
  0x16   :  { %1642 = vset.pattern.permute.xlu1 %v1867_v28  ;;  %s1450_s27 = sshll.u32 %s1879_s0, 4  ;;  %p1792_p0 = scmp.ne.s32.totalorder %s1464_s24, %s1791_s28  ;;  %s2656_s27 = int_to_ptr.vmem [resolvable:$true] %s1450_s27 }
  0x17   :  { %1589 = vmatpush3.bf16.msra.mxu0 %v1586_v22  ;;  %1614 = vmatpush3.bf16.msra.mxu1 %v1586_v22  ;;  %p1796_p1 = scmp.lt.s32.totalorder %s1464_s24, %s1464_s24  ;;  %p1797_p2 = scmp.lt.s32.totalorder %s1791_s28, %s1791_s28 }
  0x18   :  { %264 = vperm.xlu1 %1642, %v1929_v0   ;;  %170 = vperm.xlu0 %1647, %v1956_v11  }
  0x19   :  { %1591 = vmatprep.subr.bf16.mxu0 %v1590_v27  ;;  %1607 = vmatprep.subr.bf16.mxu1 %v1590_v27  ;;  %p1798_p3 = por %p1797_p2, %p1796_p1 }
  0x1b   :  { %1593 = vmatpush3.bf16.msra.mxu0 %v1590_v27  ;;  %1615 = vmatpush3.bf16.msra.mxu1 %v1590_v27  ;;  %p1799_p4 = pnand %p1798_p3, %p1792_p0 }
  0x1c   :  { %268 = vperm.xlu1 %1642, %v1956_v11   ;;  %54 = vperm.xlu0 %1647, %v48_v31  }
  0x1d   :  { %1595 = vmatprep.subr.bf16.mxu0 %v1594_v32  ;;  %1608 = vmatprep.subr.bf16.mxu1 %v1594_v32 }
  0x1f   :  { %1597 = vmatpush3.bf16.msra.mxu0 %v1594_v32  ;;  %1616 = vmatpush3.bf16.msra.mxu1 %v1594_v32 }
  0x20   :  { %1644 = vset.pattern.permute.xlu1 %v1863_v13  ;;  %180 = vperm.xlu0 %1647, %v160_v35  }
  0x21   :  { %292 = vperm.xlu1 %1644, %v1956_v11   ;;  %1599 = vmatprep.subr.bf16.mxu0 %v1598_v36 }
  0x22   :  { %1609 = vmatprep.subr.bf16.mxu1 %v1598_v36 }
  0x23   :  { %1601 = vmatpush3.bf16.msra.mxu0 %v1598_v36  ;;  %1617 = vmatpush3.bf16.msra.mxu1 %v1598_v36 }
  0x24   :  { %1651 = vset.pattern.permute.xlu0 %v1862_v4 }
  0x25   :  { %1645 = vset.pattern.permute.xlu1 %v1864_v19  ;;  %204 = vperm.xlu0 %1651, %v160_v35  }
  0x26   :  { %312 = vperm.xlu1 %1645, %v1929_v0   ;;  %1565 = vmatmul.mubr.f32.vlgmr.msra.gmra.mrb[0].mxu0 %v29_v37 }
  0x27   :  { %1568 = vmatmul.mubr.f32.vlgmr.msra.gmra.mrb[0].mxu1 %v31_v38 }
  0x29   :  { %1652 = vset.pattern.permute.xlu0 %v1865_v23 }
  0x2a   :  { %1648 = vset.pattern.permute.xlu1 %v1868_v39  ;;  %244 = vperm.xlu0 %1652, %v1956_v11  }
  0x2b   :  { %336 = vperm.xlu1 %1648, %v1929_v0  }
  0x2e   :  { %248 = vperm.xlu0 %1652, %v159_v40  }
  0x2f   :  { %340 = vperm.xlu1 %1648, %v1956_v11   ;;  %v2110_v11 = vsub.s32 1, %v184_v9 }
  0x31   :  { %v2135_v22 = vrot.slane %v161_v12, %v2110_v11 }
  0x32   :  { %1656 = vset.pattern.permute.xlu0 %v1867_v28 }
  0x33   :  { %1649 = vset.pattern.permute.xlu1 %v1866_v24  ;;  %276 = vperm.xlu0 %1656, %v160_v35  }
  0x34   :  { %59 = vperm.xlu1 %1649, %v49_v41  }
  0x37   :  { %1658 = vset.pattern.permute.xlu0 %v1864_v19 }
  0x38   :  { %175 = vperm.xlu1 %1649, %v159_v40   ;;  %320 = vperm.xlu0 %1658, %v159_v40  }
  0x3c   :  { %1650 = vset.pattern.permute.xlu1 %v1862_v4  ;;  %1661 = vset.pattern.permute.xlu0 %v1868_v39 }
  0x3d   :  { %200 = vperm.xlu1 %1650, %v159_v40   ;;  %348 = vperm.xlu0 %1661, %v160_v35  }
  0x41   :  { %1653 = vset.pattern.permute.xlu1 %v1861_v3 }
  0x42   :  { %224 = vperm.xlu1 %1653, %v159_v40  }
  0x46   :  { %228 = vperm.xlu1 %1653, %v160_v35  }
  0x4a   :  { %1654 = vset.pattern.permute.xlu1 %v1865_v23 }
  0x4b   :  { %252 = vperm.xlu1 %1654, %v160_v35  }
  0x4f   :  { %1655 = vset.pattern.permute.xlu1 %v1867_v28  ;;  %v258_v28 = vrot.slane %v161_v12, %v2129_v20 }
  0x50   :  { %272 = vperm.xlu1 %1655, %v159_v40  }
  0x54   :  { %1657 = vset.pattern.permute.xlu1 %v1863_v13  ;;  %v2115_v13 = vsub.s32 5, %v184_v9 }
  0x55   :  { %296 = vperm.xlu1 %1657, %v159_v40  }
  0x56   :  { %v306_v23 = vrot.slane %v161_v12, %v2115_v13 }
  0x59   :  { %300 = vperm.xlu1 %1657, %v160_v35  }
  0x5d   :  { %1659 = vset.pattern.permute.xlu1 %v1864_v19  ;;  %v2127_v19 = vsub.s32 0, %v184_v9 }
  0x5e   :  { %324 = vperm.xlu1 %1659, %v160_v35  }
  0x5f   :  { %v186_v27 = vrot.slane %v161_v12, %v2127_v19 }
  0x62   :  { %1660 = vset.pattern.permute.xlu1 %v1868_v39 }
  0x63   :  { %344 = vperm.xlu1 %1660, %v159_v40  }
  0x67   :  { %1662 = vset.pattern.permute.xlu1 %v1866_v24  ;;  %v330_v24 = vrot.slane %v161_v12, %v2117_v14 }
  0x68   :  { %64 = vperm.xlu1 %1662, %v50_v42  }
  0x6c   :  { %69 = vperm.xlu1 %1662, %v51_v43  }
  0x81   :  { %v2052_v44 = vpop.permute.xlu1 %192  ;;  %v2068_v52 = vpop.permute.xlu0 %216 }
  0x82   :  { %2757 = vst [vmem:[#allocation9_spill] sm:$0xff] %v2052_v44  ;;  %2765 = vst [vmem:[#allocation17_spill] sm:$0xff] %v2068_v52  ;;  %v235_v35 = vmul.f32 %v2132_v21, %v2068_v52  ;;  %v211_v36 = vmul.f32 %v2135_v22, %v2052_v44 }
  0x87   :  { %v2054_v45 = vpop.permute.xlu1 %196 }
  0x88   :  { %2758 = vst [vmem:[#allocation10_spill] sm:$0xff] %v2054_v45  ;;  %v2072_v54 = vpop.permute.xlu0 %288  ;;  %v212_v9 = vmul.f32 %v2135_v22, %v2054_v45 }
  0x89   :  { %2767 = vst [vmem:[#allocation19_spill] sm:$0xff] %v2072_v54  ;;  %v307_v37 = vmul.f32 %v306_v23, %v2072_v54 }
  0x8c   :  { %v2056_v46 = vpop.permute.xlu1 %220 }
  0x8d   :  { %2759 = vst [vmem:[#allocation11_spill] sm:$0xff] %v2056_v46  ;;  %v2078_v57 = vpop.permute.xlu0 %316  ;;  %v236_v41 = vmul.f32 %v2132_v21, %v2056_v46 }
  0x8e   :  { %2769 = vst [vmem:[#allocation21_spill] sm:$0xff] %v2078_v57  ;;  %v332_v29 = vmul.f32 %v330_v24, %v2078_v57 }
  0x91   :  { %v2058_v47 = vpop.permute.xlu1 %240 }
  0x92   :  { %2760 = vst [vmem:[#allocation12_spill] sm:$0xff] %v2058_v47  ;;  %v259_v43 = vmul.f32 %v258_v28, %v2058_v47 }
  0x93   :  { %v2082_v59 = vpop.permute.xlu0 %165 }
  0x94   :  { %2770 = vst [vmem:[#allocation22_spill] sm:$0xff] %v2082_v59  ;;  %v187_v42 = vmul.f32 %v186_v27, %v2082_v59  ;;  %v363_v57 = vadd.f32 %v259_v43, %v235_v35 }
  0x97   :  { %v2060_v48 = vpop.permute.xlu1 %264  ;;  %v2086_v61 = vpop.permute.xlu0 %170 }
  0x98   :  { %2761 = vst [vmem:[#allocation13_spill] sm:$0xff] %v2060_v48  ;;  %v283_v38 = vmul.f32 %v282_v25, %v2060_v48  ;;  %v188_v12 = vmul.f32 %v186_v27, %v2086_v61 }
  0x9a   :  { %v367_v52 = vadd.f32 %v307_v37, %v283_v38 }
  0x9b   :  { %v2062_v49 = vpop.permute.xlu1 %268  ;;  %v2090_v63 = vpop.permute.xlu0 %54 }
  0x9c   :  { %2762 = vst [vmem:[#allocation14_spill] sm:$0xff] %v2062_v49  ;;  %v284_v30 = vmul.f32 %v282_v25, %v2062_v49 }
  0x9f   :  { %v2094_v1 = vpop.permute.xlu0 %180 }
  0xa0   :  { %v2064_v50 = vpop.permute.xlu1 %292  ;;  %v190_v47 = vmul.f32 %v186_v27, %v2094_v1 }
  0xa1   :  { %2763 = vst [vmem:[#allocation15_spill] sm:$0xff] %v2064_v50  ;;  %v308_v31 = vmul.f32 %v306_v23, %v2064_v50  ;;  %v360_v50 = vadd.f32 %v212_v9, %v188_v12 }
  0xa3   :  { %v368_v54 = vadd.f32 %v308_v31, %v284_v30 }
  0xa4   :  { %v2098_v3 = vpop.permute.xlu0 %204 }
  0xa5   :  { %v2066_v51 = vpop.permute.xlu1 %312  ;;  %v214_v49 = vmul.f32 %v2135_v22, %v2098_v3 }
  0xa6   :  { %2764 = vst [vmem:[#allocation16_spill] sm:$0xff] %v2066_v51  ;;  %v331_v39 = vmul.f32 %v330_v24, %v2066_v51 }
  0xa9   :  { %v2102_v5 = vpop.permute.xlu0 %244 }
  0xaa   :  { %v2070_v53 = vpop.permute.xlu1 %336  ;;  %2771 = vst [vmem:[#allocation23_spill] sm:$0xff] %v2102_v5  ;;  %v260_v6 = vmul.f32 %v258_v28, %v2102_v5 }
  0xab   :  { %2766 = vst [vmem:[#allocation18_spill] sm:$0xff] %v2070_v53  ;;  %v355_v40 = vmul.f32 %v354_v26, %v2070_v53 }
  0xac   :  { %v364_v59 = vadd.f32 %v260_v6, %v236_v41 }
  0xad   :  { %v2104_v7 = vpop.permute.xlu0 %248  ;;  %v371_v51 = vadd.f32 %v355_v40, %v331_v39  ;;  %v362_v40 = vadd.f32 %v214_v49, %v190_v47 }
  0xae   :  { %v2074_v55 = vpop.permute.xlu1 %340  ;;  %v376_v38 = vadd.f32 %v364_v59, %v360_v50 }
  0xaf   :  { %2768 = vst [vmem:[#allocation20_spill] sm:$0xff] %v2074_v55  ;;  %v356_v32 = vmul.f32 %v354_v26, %v2074_v55  ;;  %v359_v55 = vadd.f32 %v211_v36, %v187_v42 }
  0xb1   :  { %v372_v48 = vadd.f32 %v356_v32, %v332_v29  ;;  %v379_v32 = vadd.f32 %v371_v51, %v367_v52  ;;  %v375_v39 = vadd.f32 %v363_v57, %v359_v55 }
  0xb2   :  { %v2123_v17 = vpop.permute.xlu0 %276 }
  0xb3   :  { %v2076_v56 = vpop.permute.xlu1 %59  ;;  %v380_v5 = vadd.f32 %v372_v48, %v368_v54  ;;  %v286_v46 = vmul.f32 %v282_v25, %v2123_v17  ;;  %v383_v12 = vadd.f32 %v379_v32, %v375_v39 }
  0xb5   :  { %v384_v48 = vadd.f32 %v380_v5, %v376_v38 }
  0xb7   :  { %v2080_v58 = vpop.permute.xlu1 %175  ;;  %v2147_v33 = vpop.permute.xlu0 %320 }
  0xb8   :  { %v333_v52 = vmul.f32 %v330_v24, %v2147_v33  ;;  %v189_v55 = vmul.f32 %v186_v27, %v2080_v58 }
  0xbc   :  { %v2084_v60 = vpop.permute.xlu1 %200  ;;  %v2167_v44 = vpop.permute.xlu0 %348 }
  0xbd   :  { %2774 = vst [vmem:[#allocation26_spill] sm:$0xff] %v2167_v44  ;;  %v358_v31 = vmul.f32 %v354_v26, %v2167_v44 }
  0xc1   :  { %v2088_v62 = vpop.permute.xlu1 %224 }
  0xc2   :  { %v237_v5 = vmul.f32 %v2132_v21, %v2088_v62 }
  0xc5   :  { %v2092_v0 = vpop.permute.xlu1 %228 }
  0xc6   :  { %v238_v35 = vmul.f32 %v2132_v21, %v2092_v0 }
  0xca   :  { %v2096_v2 = vpop.permute.xlu1 %252 }
  0xcb   :  { %v262_v36 = vmul.f32 %v258_v28, %v2096_v2 }
  0xcd   :  { %v366_v51 = vadd.f32 %v262_v36, %v238_v35 }
  0xcf   :  { %v2100_v4 = vpop.permute.xlu1 %272 }
  0xd0   :  { %v285_v50 = vmul.f32 %v282_v25, %v2100_v4 }
  0xd4   :  { %v2106_v8 = vpop.permute.xlu1 %296 }
  0xd5   :  { %v309_v47 = vmul.f32 %v306_v23, %v2106_v8 }
  0xd8   :  { %v2125_v18 = vpop.permute.xlu1 %300 }
  0xd9   :  { %2772 = vst [vmem:[#allocation24_spill] sm:$0xff] %v2125_v18  ;;  %v310_v29 = vmul.f32 %v306_v23, %v2125_v18  ;;  %v378_v23 = vadd.f32 %v366_v51, %v362_v40 }
  0xdb   :  { %v370_v54 = vadd.f32 %v310_v29, %v286_v46 }
  0xdd   :  { %v2149_v34 = vpop.permute.xlu1 %324 }
  0xde   :  { %2773 = vst [vmem:[#allocation25_spill] sm:$0xff] %v2149_v34  ;;  %v334_v30 = vmul.f32 %v330_v24, %v2149_v34 }
  0xe0   :  { %v374_v42 = vadd.f32 %v358_v31, %v334_v30 }
  0xe2   :  { %v2169_v53 = vpop.permute.xlu1 %344  ;;  %v382_v24 = vadd.f32 %v374_v42, %v370_v54 }
  0xe3   :  { %v357_v46 = vmul.f32 %v354_v26, %v2169_v53  ;;  %v369_v26 = vadd.f32 %v309_v47, %v285_v50 }
  0xe4   :  { %v386_v32 = vadd.f32 %v382_v24, %v378_v23 }
  0xe5   :  { %v373_v30 = vadd.f32 %v357_v46, %v333_v52 }
  0xe7   :  { %v65_v37 = vpop.permute.xlu1 %64  ;;  %v381_v35 = vadd.f32 %v373_v30, %v369_v26  ;;  %v2775_v30 = vld [vmem:[#allocation11_spill] sm:$0xff] }
  0xeb   :  { %v70_v57 = vpop.permute.xlu1 %69 }
  0xf9   :  { %v1566_v41 = vpop.f32.mrb[0].mxu0 }
  0xfa   :  { %v2182_v43 = vadd.f32 %v1566_v41, %v2076_v56  ;;  %v1569_v6 = vpop.f32.mrb[0].mxu1  ;;  %v138_v9 = vpop.f32.mrb[1].mxu0  ;;  %v261_v56 = vmul.f32 %v258_v28, %v2104_v7 }
  0xfb   :  { %v2186_v44 = vadd.f32 %v138_v9, %v2090_v63  ;;  %v148_v34 = vpop.f32.mrb[1].mxu1  ;;  %v213_v63 = vmul.f32 %v2135_v22, %v2084_v60  ;;  %v2199_v31 = vadd.f32 %v1569_v6, %v70_v57  ;;  %v162_v6 = vld [vmem:[%s2711_s5] sm:$0xff]  ;;  %s1869_s5 = smov 8  }
  0xfc   :  { %v388_v49 = vadd.f32 %v384_v48, %v2182_v43  ;;  %v365_v28 = vadd.f32 %v261_v56, %v237_v5  ;;  %v2202_v38 = vadd.f32 %v148_v34, %v65_v37 }
  0xfd   :  { %v387_v59 = vadd.f32 %v383_v12, %v2186_v44  ;;  %v361_v27 = vadd.f32 %v213_v63, %v189_v55  ;;  %v390_v36 = vadd.f32 %v386_v32, %v2199_v31 }
  0xfe   :  { %v1489_v25 = vmul.f32 -1.442695, %v388_v49 }
  0xff   :  { %v1488_v29 = vmul.f32 -1.442695, %v387_v59  ;;  %v377_v22 = vadd.f32 %v365_v28, %v361_v27  ;;  %v1490_v39 = vmul.f32 -1.442695, %v390_v36  ;;  %v2776_v28 = vld [vmem:[#allocation23_spill] sm:$0xff] }
 0x100   :  { %1663 = vpow2.f32 %v1489_v25 }
 0x101   :  { %1665 = vpow2.f32 %v1488_v29  ;;  %v385_v21 = vadd.f32 %v381_v35, %v377_v22  ;;  %v2777_v35 = vld [vmem:[#allocation14_spill] sm:$0xff]  ;;  %v2778_v22 = vld [vmem:[#allocation15_spill] sm:$0xff] }
 0x102   :  { %1667 = vpow2.f32 %v1490_v39  ;;  %v2779_v39 = vld [vmem:[#allocation21_spill] sm:$0xff] }
 0x103   :  { %v389_v40 = vadd.f32 %v385_v21, %v2202_v38 }
 0x10a   :  { %v1664_v41 = vpop.eup %1663 }
 0x10b   :  { %v401_v48 = vadd.f32 1.0, %v1664_v41  ;;  %v1666_v54 = vpop.eup %1665 }
 0x10c   :  { %v400_v42 = vadd.f32 1.0, %v1666_v54  ;;  %v1668_v9 = vpop.eup %1667 }
 0x10d   :  { %1669 = vrcp.f32 %v401_v48  ;;  %v402_v52 = vadd.f32 1.0, %v1668_v9 }
 0x10e   :  { %1671 = vtanh.f32 %v389_v40  ;;  %v2780_v40 = vld [vmem:[#allocation20_spill] sm:$0xff] }
 0x10f   :  { %1673 = vrcp.f32 %v400_v42 }
 0x110   :  { %1675 = vrcp.f32 %v402_v52  ;;  %v2783_v52 = vld [vmem:[#allocation17_spill] sm:$0xff] }
 0x117   :  { %v1670_v12 = vpop.eup %1669 }
 0x118   :  { %v1672_v34 = vpop.eup %1671  ;;  %v410_v37 = vmul.f32 %v1670_v12, %v162_v6  ;;  %v2781_v6 = vld [vmem:[#allocation22_spill] sm:$0xff]  ;;  %v2782_v12 = vld [vmem:[#allocation9_spill] sm:$0xff] }
 0x119   :  { %v1674_v51 = vpop.eup %1673 }
 0x11a   :  { %v411_v50 = vmul.f32 %v1674_v51, %v1672_v34  ;;  %v1676_v46 = vpop.eup %1675 }
 0x11c   :  { %v2208_v47 = vadd.f32 %v411_v50, %v410_v37 }
 0x11e   :  { %1677 = vtanh.f32 %v2208_v47 }
 0x128   :  { %v1678_v49 = vpop.eup %1677 }
 0x129   :  { %v414_v55 = vmul.f32 %v1678_v49, %v1676_v46  ;;  %v2784_v46 = vld [vmem:[#allocation12_spill] sm:$0xff] }
 0x12b   :  { %v420_v56 = vrot.slane %v414_v55, %v2127_v19  ;;  %v428_v57 = vrot.slane %v414_v55, %v2110_v11  ;;  %v436_v59 = vrot.slane %v414_v55, %v2108_v10  ;;  %v444_v63 = vrot.slane %v414_v55, %v2129_v20  ;;  %416 = vst.msk [vmem:[#allocation2] sm:$0xff] %vm415_vm0, %v414_v55 }
 0x12c   :  { %v452_v5 = vrot.slane %v414_v55, %v2119_v15  ;;  %v460_v24 = vrot.slane %v414_v55, %v2115_v13  ;;  %v468_v25 = vrot.slane %v414_v55, %v2117_v14  ;;  %v476_v23 = vrot.slane %v414_v55, %v2121_v16 }
 0x12d   :  { %v422_v29 = vmul.f32 %v420_v56, %v2086_v61  ;;  %v430_v26 = vmul.f32 %v428_v57, %v2054_v45  ;;  %v438_v27 = vmul.f32 %v436_v59, %v2775_v30  ;;  %v446_v32 = vmul.f32 %v444_v63, %v2776_v28 }
 0x12e   :  { %v454_v36 = vmul.f32 %v452_v5, %v2777_v35  ;;  %v462_v21 = vmul.f32 %v460_v24, %v2778_v22  ;;  %v470_v41 = vmul.f32 %v468_v25, %v2779_v39  ;;  %v478_v48 = vmul.f32 %v476_v23, %v2780_v40  ;;  %v2785_v35 = vld [vmem:[#allocation13_spill] sm:$0xff]  ;;  %v2786_v22 = vld [vmem:[#allocation19_spill] sm:$0xff]  ;;  %v2787_v39 = vld [vmem:[#allocation16_spill] sm:$0xff] }
 0x12f   :  { %v482_v54 = vadd.f32 %v430_v26, %v422_v29  ;;  %v486_v42 = vadd.f32 %v446_v32, %v438_v27  ;;  %v421_v9 = vmul.f32 %v420_v56, %v2781_v6  ;;  %v429_v34 = vmul.f32 %v428_v57, %v2782_v12  ;;  %v2788_v29 = vld [vmem:[#allocation18_spill] sm:$0xff] }
 0x130   :  { %v490_v37 = vadd.f32 %v462_v21, %v454_v36  ;;  %v494_v51 = vadd.f32 %v478_v48, %v470_v41  ;;  %v437_v50 = vmul.f32 %v436_v59, %v2783_v52  ;;  %v445_v49 = vmul.f32 %v444_v63, %v2784_v46 }
 0x131   :  { %v498_v55 = vadd.f32 %v486_v42, %v482_v54  ;;  %v453_v28 = vmul.f32 %v452_v5, %v2785_v35  ;;  %v461_v30 = vmul.f32 %v460_v24, %v2786_v22  ;;  %v469_v45 = vmul.f32 %v468_v25, %v2787_v39 }
 0x132   :  { %v502_v40 = vadd.f32 %v494_v51, %v490_v37  ;;  %v477_v26 = vmul.f32 %v476_v23, %v2788_v29  ;;  %v481_v27 = vadd.f32 %v429_v34, %v421_v9  ;;  %v485_v32 = vadd.f32 %v445_v49, %v437_v50  ;;  %v2789_v51 = vld [vmem:[#allocation25_spill] sm:$0xff]  ;;  %v2790_v9 = vld [vmem:[#allocation26_spill] sm:$0xff] }
 0x133   :  { %v489_v6 = vadd.f32 %v461_v30, %v453_v28  ;;  %v424_v36 = vmul.f32 %v420_v56, %v2094_v1  ;;  %v432_v21 = vmul.f32 %v428_v57, %v2098_v3  ;;  %v440_v41 = vmul.f32 %v436_v59, %v2092_v0 }
 0x134   :  { %v506_v48 = vadd.f32 %v502_v40, %v498_v55  ;;  %v493_v54 = vadd.f32 %v477_v26, %v469_v45  ;;  %v497_v42 = vadd.f32 %v485_v32, %v481_v27  ;;  %v448_v35 = vmul.f32 %v444_v63, %v2096_v2 }
 0x135   :  { %v456_v22 = vmul.f32 %v452_v5, %v2123_v17  ;;  %v464_v37 = vmul.f32 %v460_v24, %v2125_v18  ;;  %v472_v29 = vmul.f32 %v468_v25, %v2789_v51  ;;  %v480_v34 = vmul.f32 %v476_v23, %v2790_v9 }
 0x136   :  { %515 = vrot.lane.b32.xlu1 %v506_v48, %s1869_s5  ;;  %v501_v30 = vadd.f32 %v493_v54, %v489_v6  ;;  %v484_v28 = vadd.f32 %v432_v21, %v424_v36  ;;  %v488_v50 = vadd.f32 %v448_v35, %v440_v41  ;;  %v423_v40 = vmul.f32 %v420_v56, %v2080_v58 }
 0x137   :  { %v492_v45 = vadd.f32 %v464_v37, %v456_v22  ;;  %v496_v49 = vadd.f32 %v480_v34, %v472_v29  ;;  %v431_v55 = vmul.f32 %v428_v57, %v2084_v60  ;;  %v439_v26 = vmul.f32 %v436_v59, %v2088_v62 }
 0x138   :  { %v505_v27 = vadd.f32 %v501_v30, %v497_v42  ;;  %v500_v32 = vadd.f32 %v488_v50, %v484_v28  ;;  %v447_v51 = vmul.f32 %v444_v63, %v2104_v7  ;;  %v455_v9 = vmul.f32 %v452_v5, %v2100_v4 }
 0x139   :  { %v504_v18 = vadd.f32 %v496_v49, %v492_v45  ;;  %v463_v48 = vmul.f32 %v460_v24, %v2106_v8  ;;  %v471_v6 = vmul.f32 %v468_v25, %v2147_v33  ;;  %v479_v35 = vmul.f32 %v476_v23, %v2169_v53 }
 0x13a   :  { %513 = vrot.lane.b32.xlu0 %v505_v27, %s1869_s5  ;;  %v483_v56 = vadd.f32 %v431_v55, %v423_v40  ;;  %v487_v22 = vadd.f32 %v447_v51, %v439_v26 }
 0x13b   :  { %v508_v57 = vadd.f32 %v504_v18, %v500_v32  ;;  %v491_v29 = vadd.f32 %v463_v48, %v455_v9  ;;  %v495_v59 = vadd.f32 %v479_v35, %v471_v6 }
 0x13c   :  { %v499_v36 = vadd.f32 %v487_v22, %v483_v56 }
 0x13d   :  { %519 = vrot.lane.b32.xlu1 %v508_v57, %s1869_s5  ;;  %v503_v63 = vadd.f32 %v495_v59, %v491_v29 }
 0x13f   :  { %v507_v21 = vadd.f32 %v503_v63, %v499_v36 }
 0x141   :  { %517 = vrot.lane.b32.xlu0 %v507_v21, %s1869_s5 }
 0x145   :  { %549 = vrot.lane.b32.xlu0 %v2208_v47, %s1869_s5 }
 0x1a8   :  { %v516_v5 = vpop.permute.xlu1 %515 }
 0x1a9   :  { %v526_v24 = vadd.f32 %v516_v5, %v2182_v43 }
 0x1ab   :  { %v1492_v25 = vmul.f32 -1.442695, %v526_v24 }
 0x1ac   :  { %v514_v23 = vpop.permute.xlu0 %513 }
 0x1ad   :  { %1679 = vpow2.f32 %v1492_v25  ;;  %v525_v18 = vadd.f32 %v514_v23, %v2186_v44  ;;  %v2792_v25 = vld [vmem:[#allocation10_spill] sm:$0xff] }
 0x1af   :  { %v1491_v41 = vmul.f32 -1.442695, %v525_v18  ;;  %v520_v54 = vpop.permute.xlu1 %519  ;;  %v2793_v18 = vld [vmem:[#allocation11_spill] sm:$0xff] }
 0x1b0   :  { %v528_v42 = vadd.f32 %v520_v54, %v2199_v31  ;;  %v2794_v54 = vld [vmem:[#allocation23_spill] sm:$0xff] }
 0x1b1   :  { %1681 = vpow2.f32 %v1491_v41 }
 0x1b2   :  { %v1493_v9 = vmul.f32 -1.442695, %v528_v42 }
 0x1b3   :  { %v518_v37 = vpop.permute.xlu0 %517 }
 0x1b4   :  { %v527_v30 = vadd.f32 %v518_v37, %v2202_v38  ;;  %v2795_v37 = vld [vmem:[#allocation14_spill] sm:$0xff] }
 0x1b7   :  { %v1680_v51 = vpop.eup %1679  ;;  %v550_v45 = vpop.permute.xlu0 %549 }
 0x1b8   :  { %v539_v34 = vadd.f32 1.0, %v1680_v51 }
 0x1ba   :  { %1683 = vrcp.f32 %v539_v34 }
 0x1bb   :  { %v1682_v47 = vpop.eup %1681  ;;  %1685 = vpow2.f32 %v1493_v9  ;;  %v2796_v9 = vld [vmem:[#allocation15_spill] sm:$0xff] }
 0x1bc   :  { %v538_v28 = vadd.f32 1.0, %v1682_v47  ;;  %1687 = vtanh.f32 %v527_v30  ;;  %v2797_v30 = vld [vmem:[#allocation21_spill] sm:$0xff] }
 0x1be   :  { %1689 = vrcp.f32 %v538_v28  ;;  %v2798_v28 = vld [vmem:[#allocation20_spill] sm:$0xff] }
 0x1c4   :  { %v1684_v50 = vpop.eup %1683 }
 0x1c5   :  { %v1686_v40 = vpop.eup %1685  ;;  %v552_v55 = vmul.f32 %v1684_v50, %v550_v45 }
 0x1c6   :  { %v1688_v49 = vpop.eup %1687  ;;  %v540_v27 = vadd.f32 1.0, %v1686_v40 }
 0x1c8   :  { %v1690_v26 = vpop.eup %1689  ;;  %1691 = vrcp.f32 %v540_v27 }
 0x1c9   :  { %v553_v32 = vmul.f32 %v1690_v26, %v1688_v49  ;;  %v2799_v49 = vld [vmem:[#allocation22_spill] sm:$0xff] }
 0x1cb   :  { %v2262_v48 = vadd.f32 %v553_v32, %v552_v55 }
 0x1cd   :  { %1693 = vtanh.f32 %v2262_v48 }
 0x1d2   :  { %v1692_v6 = vpop.eup %1691 }
 0x1d7   :  { %v1694_v35 = vpop.eup %1693 }
 0x1d8   :  { %v2265_v56 = vmul.f32 %v1694_v35, %v1692_v6 }
 0x1da   :  { %2791 = vst [vmem:[#allocation9_spill] sm:$0xff] %v2265_v56  ;;  %v566_v22 = vrot.slane %v2265_v56, %v2127_v19  ;;  %v574_v57 = vrot.slane %v2265_v56, %v2110_v11  ;;  %v582_v29 = vrot.slane %v2265_v56, %v2108_v10  ;;  %v590_v59 = vrot.slane %v2265_v56, %v2129_v20 }
 0x1db   :  { %v598_v36 = vrot.slane %v2265_v56, %v2119_v15  ;;  %v606_v63 = vrot.slane %v2265_v56, %v2115_v13  ;;  %v614_v21 = vrot.slane %v2265_v56, %v2117_v14  ;;  %v622_v5 = vrot.slane %v2265_v56, %v2121_v16 }
 0x1dc   :  { %v568_v24 = vmul.f32 %v566_v22, %v2086_v61  ;;  %v576_v23 = vmul.f32 %v574_v57, %v2792_v25  ;;  %v584_v41 = vmul.f32 %v582_v29, %v2793_v18  ;;  %v592_v42 = vmul.f32 %v590_v59, %v2794_v54 }
 0x1dd   :  { %v600_v51 = vmul.f32 %v598_v36, %v2795_v37  ;;  %v608_v34 = vmul.f32 %v606_v63, %v2796_v9  ;;  %v616_v47 = vmul.f32 %v614_v21, %v2797_v30  ;;  %v624_v50 = vmul.f32 %v622_v5, %v2798_v28  ;;  %v2800_v37 = vld [vmem:[#allocation13_spill] sm:$0xff]  ;;  %v2801_v9 = vld [vmem:[#allocation19_spill] sm:$0xff] }
 0x1de   :  { %v628_v40 = vadd.f32 %v576_v23, %v568_v24  ;;  %v632_v45 = vadd.f32 %v592_v42, %v584_v41  ;;  %v567_v55 = vmul.f32 %v566_v22, %v2799_v49  ;;  %v575_v26 = vmul.f32 %v574_v57, %v2782_v12  ;;  %v2802_v24 = vld [vmem:[#allocation18_spill] sm:$0xff] }
 0x1df   :  { %v636_v27 = vadd.f32 %v608_v34, %v600_v51  ;;  %v640_v32 = vadd.f32 %v624_v50, %v616_v47  ;;  %v583_v6 = vmul.f32 %v582_v29, %v2783_v52  ;;  %v591_v35 = vmul.f32 %v590_v59, %v2784_v46 }
 0x1e0   :  { %v644_v56 = vadd.f32 %v632_v45, %v628_v40  ;;  %v599_v54 = vmul.f32 %v598_v36, %v2800_v37  ;;  %v607_v18 = vmul.f32 %v606_v63, %v2801_v9  ;;  %v615_v30 = vmul.f32 %v614_v21, %v2787_v39  ;;  %v2803_v39 = vld [vmem:[#allocation24_spill] sm:$0xff] }
 0x1e1   :  { %v648_v28 = vadd.f32 %v640_v32, %v636_v27  ;;  %v623_v23 = vmul.f32 %v622_v5, %v2802_v24  ;;  %v627_v41 = vadd.f32 %v575_v26, %v567_v55  ;;  %v631_v42 = vadd.f32 %v591_v35, %v583_v6  ;;  %v2804_v32 = vld [vmem:[#allocation25_spill] sm:$0xff]  ;;  %v2805_v55 = vld [vmem:[#allocation26_spill] sm:$0xff] }
 0x1e2   :  { %v635_v49 = vadd.f32 %v607_v18, %v599_v54  ;;  %v570_v51 = vmul.f32 %v566_v22, %v2094_v1  ;;  %v578_v34 = vmul.f32 %v574_v57, %v2098_v3  ;;  %v586_v47 = vmul.f32 %v582_v29, %v2092_v0 }
 0x1e3   :  { %v652_v50 = vadd.f32 %v648_v28, %v644_v56  ;;  %v639_v40 = vadd.f32 %v623_v23, %v615_v30  ;;  %v643_v45 = vadd.f32 %v631_v42, %v627_v41  ;;  %v594_v37 = vmul.f32 %v590_v59, %v2096_v2 }
 0x1e4   :  { %v602_v9 = vmul.f32 %v598_v36, %v2123_v17  ;;  %v610_v27 = vmul.f32 %v606_v63, %v2803_v39  ;;  %v618_v24 = vmul.f32 %v614_v21, %v2804_v32  ;;  %v626_v26 = vmul.f32 %v622_v5, %v2805_v55 }
 0x1e5   :  { %661 = vrot.lane.b32.xlu0 %v652_v50, %s1869_s5  ;;  %v647_v18 = vadd.f32 %v639_v40, %v635_v49  ;;  %v630_v54 = vadd.f32 %v578_v34, %v570_v51  ;;  %v634_v6 = vadd.f32 %v594_v37, %v586_v47  ;;  %v569_v35 = vmul.f32 %v566_v22, %v2080_v58 }
 0x1e6   :  { %v638_v56 = vadd.f32 %v610_v27, %v602_v9  ;;  %v642_v30 = vadd.f32 %v626_v26, %v618_v24  ;;  %v577_v28 = vmul.f32 %v574_v57, %v2084_v60  ;;  %v585_v23 = vmul.f32 %v582_v29, %v2088_v62 }
 0x1e7   :  { %v651_v41 = vadd.f32 %v647_v18, %v643_v45  ;;  %v646_v42 = vadd.f32 %v634_v6, %v630_v54  ;;  %v593_v39 = vmul.f32 %v590_v59, %v2104_v7  ;;  %v601_v32 = vmul.f32 %v598_v36, %v2100_v4 }
 0x1e8   :  { %v650_v55 = vadd.f32 %v642_v30, %v638_v56  ;;  %v609_v50 = vmul.f32 %v606_v63, %v2106_v8  ;;  %v617_v49 = vmul.f32 %v614_v21, %v2147_v33  ;;  %v625_v37 = vmul.f32 %v622_v5, %v2169_v53 }
 0x1e9   :  { %659 = vrot.lane.b32.xlu1 %v651_v41, %s1869_s5  ;;  %v629_v22 = vadd.f32 %v577_v28, %v569_v35  ;;  %v633_v9 = vadd.f32 %v593_v39, %v585_v23 }
 0x1ea   :  { %v654_v57 = vadd.f32 %v650_v55, %v646_v42  ;;  %v637_v24 = vadd.f32 %v609_v50, %v601_v32  ;;  %v641_v29 = vadd.f32 %v625_v37, %v617_v49 }
 0x1eb   :  { %v645_v51 = vadd.f32 %v633_v9, %v629_v22 }
 0x1ec   :  { %665 = vrot.lane.b32.xlu0 %v654_v57, %s1869_s5  ;;  %v649_v59 = vadd.f32 %v641_v29, %v637_v24 }
 0x1ee   :  { %v653_v34 = vadd.f32 %v649_v59, %v645_v51 }
 0x1f0   :  { %663 = vrot.lane.b32.xlu1 %v653_v34, %s1869_s5 }
 0x1f4   :  { %695 = vrot.lane.b32.xlu1 %v2262_v48, %s1869_s5 }
 0x257   :  { %v662_v36 = vpop.permute.xlu0 %661 }
 0x258   :  { %v672_v63 = vadd.f32 %v662_v36, %v2182_v43 }
 0x25a   :  { %v1495_v21 = vmul.f32 -1.442695, %v672_v63 }
 0x25b   :  { %v660_v5 = vpop.permute.xlu1 %659 }
 0x25c   :  { %1695 = vpow2.f32 %v1495_v21  ;;  %v671_v39 = vadd.f32 %v660_v5, %v2186_v44  ;;  %v2807_v5 = vld [vmem:[#allocation11_spill] sm:$0xff] }
 0x25e   :  { %v1494_v47 = vmul.f32 -1.442695, %v671_v39  ;;  %v666_v40 = vpop.permute.xlu0 %665 }
 0x25f   :  { %v674_v45 = vadd.f32 %v666_v40, %v2199_v31 }
 0x260   :  { %1697 = vpow2.f32 %v1494_v47  ;;  %v2808_v47 = vld [vmem:[#allocation23_spill] sm:$0xff] }
 0x261   :  { %v1496_v55 = vmul.f32 -1.442695, %v674_v45  ;;  %v2809_v45 = vld [vmem:[#allocation14_spill] sm:$0xff] }
 0x262   :  { %v664_v27 = vpop.permute.xlu1 %663 }
 0x263   :  { %v673_v18 = vadd.f32 %v664_v27, %v2202_v38 }
 0x266   :  { %v1696_v32 = vpop.eup %1695  ;;  %v696_v56 = vpop.permute.xlu1 %695 }
 0x267   :  { %v685_v26 = vadd.f32 1.0, %v1696_v32  ;;  %v2810_v32 = vld [vmem:[#allocation15_spill] sm:$0xff] }
 0x269   :  { %1699 = vrcp.f32 %v685_v26  ;;  %v2811_v26 = vld [vmem:[#allocation21_spill] sm:$0xff] }
 0x26a   :  { %v1698_v48 = vpop.eup %1697  ;;  %1701 = vpow2.f32 %v1496_v55 }
 0x26b   :  { %v684_v54 = vadd.f32 1.0, %v1698_v48  ;;  %1703 = vtanh.f32 %v673_v18  ;;  %v2812_v48 = vld [vmem:[#allocation20_spill] sm:$0xff] }
 0x26d   :  { %1705 = vrcp.f32 %v684_v54 }
 0x273   :  { %v1700_v6 = vpop.eup %1699 }
 0x274   :  { %v1702_v35 = vpop.eup %1701  ;;  %v698_v28 = vmul.f32 %v1700_v6, %v696_v56  ;;  %v2813_v56 = vld [vmem:[#allocation22_spill] sm:$0xff] }
 0x275   :  { %v1704_v30 = vpop.eup %1703  ;;  %v686_v41 = vadd.f32 1.0, %v1702_v35 }
 0x277   :  { %v1706_v23 = vpop.eup %1705  ;;  %1707 = vrcp.f32 %v686_v41 }
 0x278   :  { %v699_v42 = vmul.f32 %v1706_v23, %v1704_v30 }
 0x27a   :  { %v2325_v50 = vadd.f32 %v699_v42, %v698_v28 }
 0x27c   :  { %1709 = vtanh.f32 %v2325_v50 }
 0x281   :  { %v1708_v49 = vpop.eup %1707 }
 0x286   :  { %v1710_v37 = vpop.eup %1709 }
 0x287   :  { %v2328_v22 = vmul.f32 %v1710_v37, %v1708_v49 }
 0x289   :  { %2806 = vst [vmem:[#allocation17_spill] sm:$0xff] %v2328_v22  ;;  %v712_v9 = vrot.slane %v2328_v22, %v2127_v19  ;;  %v720_v57 = vrot.slane %v2328_v22, %v2110_v11  ;;  %v728_v24 = vrot.slane %v2328_v22, %v2108_v10  ;;  %v736_v29 = vrot.slane %v2328_v22, %v2129_v20 }
 0x28a   :  { %v744_v51 = vrot.slane %v2328_v22, %v2119_v15  ;;  %v752_v59 = vrot.slane %v2328_v22, %v2115_v13  ;;  %v760_v34 = vrot.slane %v2328_v22, %v2117_v14  ;;  %v768_v36 = vrot.slane %v2328_v22, %v2121_v16  ;;  %v2814_v22 = vld [vmem:[#allocation13_spill] sm:$0xff] }
 0x28b   :  { %v714_v63 = vmul.f32 %v712_v9, %v2086_v61  ;;  %v722_v21 = vmul.f32 %v720_v57, %v2792_v25  ;;  %v730_v39 = vmul.f32 %v728_v24, %v2807_v5  ;;  %v738_v40 = vmul.f32 %v736_v29, %v2808_v47 }
 0x28c   :  { %v746_v27 = vmul.f32 %v744_v51, %v2809_v45  ;;  %v754_v55 = vmul.f32 %v752_v59, %v2810_v32  ;;  %v762_v18 = vmul.f32 %v760_v34, %v2811_v26  ;;  %v770_v54 = vmul.f32 %v768_v36, %v2812_v48  ;;  %v2815_v32 = vld [vmem:[#allocation19_spill] sm:$0xff]  ;;  %v2816_v26 = vld [vmem:[#allocation16_spill] sm:$0xff] }
 0x28d   :  { %v774_v6 = vadd.f32 %v722_v21, %v714_v63  ;;  %v778_v35 = vadd.f32 %v738_v40, %v730_v39  ;;  %v713_v30 = vmul.f32 %v712_v9, %v2813_v56  ;;  %v721_v28 = vmul.f32 %v720_v57, %v2782_v12  ;;  %v2817_v63 = vld [vmem:[#allocation18_spill] sm:$0xff] }
 0x28e   :  { %v782_v23 = vadd.f32 %v754_v55, %v746_v27  ;;  %v786_v41 = vadd.f32 %v770_v54, %v762_v18  ;;  %v729_v42 = vmul.f32 %v728_v24, %v2783_v52  ;;  %v737_v49 = vmul.f32 %v736_v29, %v2784_v46 }
 0x28f   :  { %v790_v37 = vadd.f32 %v778_v35, %v774_v6  ;;  %v745_v45 = vmul.f32 %v744_v51, %v2814_v22  ;;  %v753_v47 = vmul.f32 %v752_v59, %v2815_v32  ;;  %v761_v5 = vmul.f32 %v760_v34, %v2816_v26  ;;  %v2818_v26 = vld [vmem:[#allocation24_spill] sm:$0xff] }
 0x290   :  { %v794_v48 = vadd.f32 %v786_v41, %v782_v23  ;;  %v769_v21 = vmul.f32 %v768_v36, %v2817_v63  ;;  %v773_v39 = vadd.f32 %v721_v28, %v713_v30  ;;  %v777_v40 = vadd.f32 %v737_v49, %v729_v42  ;;  %v2819_v41 = vld [vmem:[#allocation25_spill] sm:$0xff]  ;;  %v2820_v30 = vld [vmem:[#allocation26_spill] sm:$0xff] }
 0x291   :  { %v781_v56 = vadd.f32 %v753_v47, %v745_v45  ;;  %v716_v27 = vmul.f32 %v712_v9, %v2094_v1  ;;  %v724_v55 = vmul.f32 %v720_v57, %v2098_v3  ;;  %v732_v18 = vmul.f32 %v728_v24, %v2092_v0 }
 0x292   :  { %v798_v54 = vadd.f32 %v794_v48, %v790_v37  ;;  %v785_v6 = vadd.f32 %v769_v21, %v761_v5  ;;  %v789_v35 = vadd.f32 %v777_v40, %v773_v39  ;;  %v740_v22 = vmul.f32 %v736_v29, %v2096_v2 }
 0x293   :  { %v748_v32 = vmul.f32 %v744_v51, %v2123_v17  ;;  %v756_v23 = vmul.f32 %v752_v59, %v2818_v26  ;;  %v764_v63 = vmul.f32 %v760_v34, %v2819_v41  ;;  %v772_v28 = vmul.f32 %v768_v36, %v2820_v30 }
 0x294   :  { %807 = vrot.lane.b32.xlu1 %v798_v54, %s1869_s5  ;;  %v793_v47 = vadd.f32 %v785_v6, %v781_v56  ;;  %v776_v45 = vadd.f32 %v724_v55, %v716_v27  ;;  %v780_v42 = vadd.f32 %v740_v22, %v732_v18  ;;  %v715_v49 = vmul.f32 %v712_v9, %v2080_v58 }
 0x295   :  { %v784_v48 = vadd.f32 %v756_v23, %v748_v32  ;;  %v788_v5 = vadd.f32 %v772_v28, %v764_v63  ;;  %v723_v37 = vmul.f32 %v720_v57, %v2084_v60  ;;  %v731_v21 = vmul.f32 %v728_v24, %v2088_v62 }
 0x296   :  { %v797_v39 = vadd.f32 %v793_v47, %v789_v35  ;;  %v792_v40 = vadd.f32 %v780_v42, %v776_v45  ;;  %v739_v26 = vmul.f32 %v736_v29, %v2104_v7  ;;  %v747_v41 = vmul.f32 %v744_v51, %v2100_v4 }
 0x297   :  { %v796_v30 = vadd.f32 %v788_v5, %v784_v48  ;;  %v755_v54 = vmul.f32 %v752_v59, %v2106_v8  ;;  %v763_v56 = vmul.f32 %v760_v34, %v2147_v33  ;;  %v771_v22 = vmul.f32 %v768_v36, %v2169_v53 }
 0x298   :  { %805 = vrot.lane.b32.xlu0 %v797_v39, %s1869_s5  ;;  %v775_v9 = vadd.f32 %v723_v37, %v715_v49  ;;  %v779_v32 = vadd.f32 %v739_v26, %v731_v21 }
 0x299   :  { %v800_v57 = vadd.f32 %v796_v30, %v792_v40  ;;  %v783_v63 = vadd.f32 %v755_v54, %v747_v41  ;;  %v787_v24 = vadd.f32 %v771_v22, %v763_v56 }
 0x29a   :  { %v791_v27 = vadd.f32 %v779_v32, %v775_v9 }
 0x29b   :  { %811 = vrot.lane.b32.xlu1 %v800_v57, %s1869_s5  ;;  %v795_v29 = vadd.f32 %v787_v24, %v783_v63 }
 0x29d   :  { %v799_v55 = vadd.f32 %v795_v29, %v791_v27 }
 0x29f   :  { %809 = vrot.lane.b32.xlu0 %v799_v55, %s1869_s5 }
 0x2a3   :  { %841 = vrot.lane.b32.xlu0 %v2325_v50, %s1869_s5 }
 0x306   :  { %v808_v51 = vpop.permute.xlu1 %807 }
 0x307   :  { %v818_v59 = vadd.f32 %v808_v51, %v2182_v43 }
 0x309   :  { %v1498_v34 = vmul.f32 -1.442695, %v818_v59 }
 0x30a   :  { %v806_v36 = vpop.permute.xlu0 %805 }
 0x30b   :  { %1711 = vpow2.f32 %v1498_v34  ;;  %v817_v26 = vadd.f32 %v806_v36, %v2186_v44  ;;  %v2822_v36 = vld [vmem:[#allocation11_spill] sm:$0xff] }
 0x30d   :  { %v1497_v18 = vmul.f32 -1.442695, %v817_v26  ;;  %v812_v6 = vpop.permute.xlu1 %811 }
 0x30e   :  { %v820_v35 = vadd.f32 %v812_v6, %v2199_v31 }
 0x30f   :  { %1713 = vpow2.f32 %v1497_v18  ;;  %v2823_v18 = vld [vmem:[#allocation23_spill] sm:$0xff] }
 0x310   :  { %v1499_v30 = vmul.f32 -1.442695, %v820_v35  ;;  %v2824_v35 = vld [vmem:[#allocation14_spill] sm:$0xff] }
 0x311   :  { %v810_v23 = vpop.permute.xlu0 %809 }
 0x312   :  { %v819_v47 = vadd.f32 %v810_v23, %v2202_v38 }
 0x315   :  { %v1712_v41 = vpop.eup %1711  ;;  %v842_v48 = vpop.permute.xlu0 %841 }
 0x316   :  { %v831_v28 = vadd.f32 1.0, %v1712_v41  ;;  %v2825_v41 = vld [vmem:[#allocation15_spill] sm:$0xff] }
 0x318   :  { %1715 = vrcp.f32 %v831_v28  ;;  %v2826_v28 = vld [vmem:[#allocation21_spill] sm:$0xff] }
 0x319   :  { %v1714_v50 = vpop.eup %1713  ;;  %1717 = vpow2.f32 %v1499_v30 }
 0x31a   :  { %v830_v45 = vadd.f32 1.0, %v1714_v50  ;;  %1719 = vtanh.f32 %v819_v47  ;;  %v2827_v50 = vld [vmem:[#allocation20_spill] sm:$0xff] }
 0x31c   :  { %1721 = vrcp.f32 %v830_v45 }
 0x322   :  { %v1716_v42 = vpop.eup %1715 }
 0x323   :  { %v1718_v49 = vpop.eup %1717  ;;  %v844_v37 = vmul.f32 %v1716_v42, %v842_v48  ;;  %v2828_v48 = vld [vmem:[#allocation22_spill] sm:$0xff] }
 0x324   :  { %v1720_v5 = vpop.eup %1719  ;;  %v832_v39 = vadd.f32 1.0, %v1718_v49 }
 0x326   :  { %v1722_v21 = vpop.eup %1721  ;;  %1723 = vrcp.f32 %v832_v39 }
 0x327   :  { %v845_v40 = vmul.f32 %v1722_v21, %v1720_v5 }
 0x329   :  { %v2388_v54 = vadd.f32 %v845_v40, %v844_v37 }
 0x32b   :  { %1725 = vtanh.f32 %v2388_v54 }
 0x330   :  { %v1724_v56 = vpop.eup %1723 }
 0x335   :  { %v1726_v22 = vpop.eup %1725 }
 0x336   :  { %v2391_v9 = vmul.f32 %v1726_v22, %v1724_v56 }
 0x338   :  { %2821 = vst [vmem:[#allocation12_spill] sm:$0xff] %v2391_v9  ;;  %v858_v32 = vrot.slane %v2391_v9, %v2127_v19  ;;  %v866_v57 = vrot.slane %v2391_v9, %v2110_v11  ;;  %v874_v63 = vrot.slane %v2391_v9, %v2108_v10  ;;  %v882_v24 = vrot.slane %v2391_v9, %v2129_v20 }
 0x339   :  { %v890_v27 = vrot.slane %v2391_v9, %v2119_v15  ;;  %v898_v29 = vrot.slane %v2391_v9, %v2115_v13  ;;  %v906_v55 = vrot.slane %v2391_v9, %v2117_v14  ;;  %v914_v51 = vrot.slane %v2391_v9, %v2121_v16  ;;  %v2829_v9 = vld [vmem:[#allocation13_spill] sm:$0xff] }
 0x33a   :  { %v860_v59 = vmul.f32 %v858_v32, %v2086_v61  ;;  %v868_v34 = vmul.f32 %v866_v57, %v2792_v25  ;;  %v876_v26 = vmul.f32 %v874_v63, %v2822_v36  ;;  %v884_v6 = vmul.f32 %v882_v24, %v2823_v18 }
 0x33b   :  { %v892_v23 = vmul.f32 %v890_v27, %v2824_v35  ;;  %v900_v30 = vmul.f32 %v898_v29, %v2825_v41  ;;  %v908_v47 = vmul.f32 %v906_v55, %v2826_v28  ;;  %v916_v45 = vmul.f32 %v914_v51, %v2827_v50  ;;  %v2830_v41 = vld [vmem:[#allocation19_spill] sm:$0xff]  ;;  %v2831_v28 = vld [vmem:[#allocation16_spill] sm:$0xff] }
 0x33c   :  { %v920_v42 = vadd.f32 %v868_v34, %v860_v59  ;;  %v924_v49 = vadd.f32 %v884_v6, %v876_v26  ;;  %v859_v5 = vmul.f32 %v858_v32, %v2828_v48  ;;  %v867_v37 = vmul.f32 %v866_v57, %v2782_v12  ;;  %v2832_v59 = vld [vmem:[#allocation18_spill] sm:$0xff] }
 0x33d   :  { %v928_v21 = vadd.f32 %v900_v30, %v892_v23  ;;  %v932_v39 = vadd.f32 %v916_v45, %v908_v47  ;;  %v875_v40 = vmul.f32 %v874_v63, %v2783_v52  ;;  %v883_v56 = vmul.f32 %v882_v24, %v2784_v46 }
 0x33e   :  { %v936_v22 = vadd.f32 %v924_v49, %v920_v42  ;;  %v891_v35 = vmul.f32 %v890_v27, %v2829_v9  ;;  %v899_v18 = vmul.f32 %v898_v29, %v2830_v41  ;;  %v907_v36 = vmul.f32 %v906_v55, %v2831_v28  ;;  %v2833_v28 = vld [vmem:[#allocation24_spill] sm:$0xff] }
 0x33f   :  { %v940_v50 = vadd.f32 %v932_v39, %v928_v21  ;;  %v915_v34 = vmul.f32 %v914_v51, %v2832_v59  ;;  %v919_v26 = vadd.f32 %v867_v37, %v859_v5  ;;  %v923_v6 = vadd.f32 %v883_v56, %v875_v40  ;;  %v2834_v39 = vld [vmem:[#allocation25_spill] sm:$0xff]  ;;  %v2835_v5 = vld [vmem:[#allocation26_spill] sm:$0xff] }
 0x340   :  { %v927_v48 = vadd.f32 %v899_v18, %v891_v35  ;;  %v862_v23 = vmul.f32 %v858_v32, %v2094_v1  ;;  %v870_v30 = vmul.f32 %v866_v57, %v2098_v3  ;;  %v878_v47 = vmul.f32 %v874_v63, %v2092_v0 }
 0x341   :  { %v944_v45 = vadd.f32 %v940_v50, %v936_v22  ;;  %v931_v42 = vadd.f32 %v915_v34, %v907_v36  ;;  %v935_v49 = vadd.f32 %v923_v6, %v919_v26  ;;  %v886_v9 = vmul.f32 %v882_v24, %v2096_v2 }
 0x342   :  { %v894_v41 = vmul.f32 %v890_v27, %v2123_v17  ;;  %v902_v21 = vmul.f32 %v898_v29, %v2833_v28  ;;  %v910_v59 = vmul.f32 %v906_v55, %v2834_v39  ;;  %v918_v37 = vmul.f32 %v914_v51, %v2835_v5 }
 0x343   :  { %953 = vrot.lane.b32.xlu0 %v944_v45, %s1869_s5  ;;  %v939_v18 = vadd.f32 %v931_v42, %v927_v48  ;;  %v922_v35 = vadd.f32 %v870_v30, %v862_v23  ;;  %v926_v40 = vadd.f32 %v886_v9, %v878_v47  ;;  %v861_v56 = vmul.f32 %v858_v32, %v2080_v58 }
 0x344   :  { %v930_v50 = vadd.f32 %v902_v21, %v894_v41  ;;  %v934_v36 = vadd.f32 %v918_v37, %v910_v59  ;;  %v869_v22 = vmul.f32 %v866_v57, %v2084_v60  ;;  %v877_v34 = vmul.f32 %v874_v63, %v2088_v62 }
 0x345   :  { %v943_v26 = vadd.f32 %v939_v18, %v935_v49  ;;  %v938_v6 = vadd.f32 %v926_v40, %v922_v35  ;;  %v885_v28 = vmul.f32 %v882_v24, %v2104_v7  ;;  %v893_v39 = vmul.f32 %v890_v27, %v2100_v4 }
 0x346   :  { %v942_v5 = vadd.f32 %v934_v36, %v930_v50  ;;  %v901_v45 = vmul.f32 %v898_v29, %v2106_v8  ;;  %v909_v48 = vmul.f32 %v906_v55, %v2147_v33  ;;  %v917_v9 = vmul.f32 %v914_v51, %v2169_v53 }
 0x347   :  { %951 = vrot.lane.b32.xlu1 %v943_v26, %s1869_s5  ;;  %v921_v32 = vadd.f32 %v869_v22, %v861_v56  ;;  %v925_v41 = vadd.f32 %v885_v28, %v877_v34 }
 0x348   :  { %v946_v57 = vadd.f32 %v942_v5, %v938_v6  ;;  %v929_v59 = vadd.f32 %v901_v45, %v893_v39  ;;  %v933_v63 = vadd.f32 %v917_v9, %v909_v48 }
 0x349   :  { %v937_v23 = vadd.f32 %v925_v41, %v921_v32 }
 0x34a   :  { %957 = vrot.lane.b32.xlu0 %v946_v57, %s1869_s5  ;;  %v941_v24 = vadd.f32 %v933_v63, %v929_v59 }
 0x34c   :  { %v945_v30 = vadd.f32 %v941_v24, %v937_v23 }
 0x34e   :  { %955 = vrot.lane.b32.xlu1 %v945_v30, %s1869_s5 }
 0x352   :  { %987 = vrot.lane.b32.xlu1 %v2388_v54, %s1869_s5 }
 0x3b5   :  { %v954_v27 = vpop.permute.xlu0 %953 }
 0x3b6   :  { %v964_v29 = vadd.f32 %v954_v27, %v2182_v43 }
 0x3b8   :  { %v1501_v55 = vmul.f32 -1.442695, %v964_v29 }
 0x3b9   :  { %v952_v51 = vpop.permute.xlu1 %951 }
 0x3ba   :  { %1727 = vpow2.f32 %v1501_v55  ;;  %v963_v28 = vadd.f32 %v952_v51, %v2186_v44  ;;  %v2837_v51 = vld [vmem:[#allocation11_spill] sm:$0xff] }
 0x3bc   :  { %v1500_v47 = vmul.f32 -1.442695, %v963_v28  ;;  %v958_v42 = vpop.permute.xlu0 %957 }
 0x3bd   :  { %v966_v49 = vadd.f32 %v958_v42, %v2199_v31 }
 0x3be   :  { %1729 = vpow2.f32 %v1500_v47  ;;  %v2838_v47 = vld [vmem:[#allocation23_spill] sm:$0xff] }
 0x3bf   :  { %v1502_v5 = vmul.f32 -1.442695, %v966_v49  ;;  %v2839_v49 = vld [vmem:[#allocation14_spill] sm:$0xff] }
 0x3c0   :  { %v956_v21 = vpop.permute.xlu1 %955 }
 0x3c1   :  { %v965_v18 = vadd.f32 %v956_v21, %v2202_v38 }
 0x3c4   :  { %v1728_v39 = vpop.eup %1727  ;;  %v988_v50 = vpop.permute.xlu1 %987 }
 0x3c5   :  { %v977_v37 = vadd.f32 1.0, %v1728_v39  ;;  %v2840_v39 = vld [vmem:[#allocation15_spill] sm:$0xff] }
 0x3c7   :  { %1731 = vrcp.f32 %v977_v37  ;;  %v2841_v37 = vld [vmem:[#allocation21_spill] sm:$0xff] }
 0x3c8   :  { %v1730_v54 = vpop.eup %1729  ;;  %1733 = vpow2.f32 %v1502_v5 }
 0x3c9   :  { %v976_v35 = vadd.f32 1.0, %v1730_v54  ;;  %1735 = vtanh.f32 %v965_v18  ;;  %v2842_v54 = vld [vmem:[#allocation20_spill] sm:$0xff] }
 0x3cb   :  { %1737 = vrcp.f32 %v976_v35 }
 0x3d1   :  { %v1732_v40 = vpop.eup %1731 }
 0x3d2   :  { %v1734_v56 = vpop.eup %1733  ;;  %v990_v22 = vmul.f32 %v1732_v40, %v988_v50  ;;  %v2843_v50 = vld [vmem:[#allocation22_spill] sm:$0xff] }
 0x3d3   :  { %v1736_v36 = vpop.eup %1735  ;;  %v978_v26 = vadd.f32 1.0, %v1734_v56 }
 0x3d5   :  { %v1738_v34 = vpop.eup %1737  ;;  %1739 = vrcp.f32 %v978_v26 }
 0x3d6   :  { %v991_v6 = vmul.f32 %v1738_v34, %v1736_v36 }
 0x3d8   :  { %v2451_v45 = vadd.f32 %v991_v6, %v990_v22 }
 0x3da   :  { %1741 = vtanh.f32 %v2451_v45 }
 0x3df   :  { %v1740_v48 = vpop.eup %1739 }
 0x3e4   :  { %v1742_v9 = vpop.eup %1741 }
 0x3e5   :  { %v2454_v32 = vmul.f32 %v1742_v9, %v1740_v48 }
 0x3e7   :  { %2836 = vst [vmem:[#allocation10_spill] sm:$0xff] %v2454_v32  ;;  %v1004_v41 = vrot.slane %v2454_v32, %v2127_v19  ;;  %v1012_v57 = vrot.slane %v2454_v32, %v2110_v11  ;;  %v1020_v59 = vrot.slane %v2454_v32, %v2108_v10  ;;  %v1028_v63 = vrot.slane %v2454_v32, %v2129_v20 }
 0x3e8   :  { %v1036_v23 = vrot.slane %v2454_v32, %v2119_v15  ;;  %v1044_v24 = vrot.slane %v2454_v32, %v2115_v13  ;;  %v1052_v30 = vrot.slane %v2454_v32, %v2117_v14  ;;  %v1060_v27 = vrot.slane %v2454_v32, %v2121_v16  ;;  %v2844_v32 = vld [vmem:[#allocation13_spill] sm:$0xff] }
 0x3e9   :  { %v1006_v29 = vmul.f32 %v1004_v41, %v2086_v61  ;;  %v1014_v55 = vmul.f32 %v1012_v57, %v2792_v25  ;;  %v1022_v28 = vmul.f32 %v1020_v59, %v2837_v51  ;;  %v1030_v42 = vmul.f32 %v1028_v63, %v2838_v47 }
 0x3ea   :  { %v1038_v21 = vmul.f32 %v1036_v23, %v2839_v49  ;;  %v1046_v5 = vmul.f32 %v1044_v24, %v2840_v39  ;;  %v1054_v18 = vmul.f32 %v1052_v30, %v2841_v37  ;;  %v1062_v35 = vmul.f32 %v1060_v27, %v2842_v54  ;;  %v2845_v39 = vld [vmem:[#allocation19_spill] sm:$0xff]  ;;  %v2846_v37 = vld [vmem:[#allocation16_spill] sm:$0xff] }
 0x3eb   :  { %v1066_v40 = vadd.f32 %v1014_v55, %v1006_v29  ;;  %v1070_v56 = vadd.f32 %v1030_v42, %v1022_v28  ;;  %v1005_v36 = vmul.f32 %v1004_v41, %v2843_v50  ;;  %v1013_v22 = vmul.f32 %v1012_v57, %v2782_v12  ;;  %v2847_v29 = vld [vmem:[#allocation18_spill] sm:$0xff] }
 0x3ec   :  { %v1074_v34 = vadd.f32 %v1046_v5, %v1038_v21  ;;  %v1078_v26 = vadd.f32 %v1062_v35, %v1054_v18  ;;  %v1021_v6 = vmul.f32 %v1020_v59, %v2783_v52  ;;  %v1029_v48 = vmul.f32 %v1028_v63, %v2784_v46 }
 0x3ed   :  { %v1082_v9 = vadd.f32 %v1070_v56, %v1066_v40  ;;  %v1037_v49 = vmul.f32 %v1036_v23, %v2844_v32  ;;  %v1045_v47 = vmul.f32 %v1044_v24, %v2845_v39  ;;  %v1053_v51 = vmul.f32 %v1052_v30, %v2846_v37  ;;  %v2848_v37 = vld [vmem:[#allocation24_spill] sm:$0xff] }
 0x3ee   :  { %v1086_v54 = vadd.f32 %v1078_v26, %v1074_v34  ;;  %v1061_v55 = vmul.f32 %v1060_v27, %v2847_v29  ;;  %v1065_v28 = vadd.f32 %v1013_v22, %v1005_v36  ;;  %v1069_v42 = vadd.f32 %v1029_v48, %v1021_v6  ;;  %v2849_v26 = vld [vmem:[#allocation25_spill] sm:$0xff]  ;;  %v2850_v36 = vld [vmem:[#allocation26_spill] sm:$0xff] }
 0x3ef   :  { %v1073_v50 = vadd.f32 %v1045_v47, %v1037_v49  ;;  %v1008_v21 = vmul.f32 %v1004_v41, %v2094_v1  ;;  %v1016_v5 = vmul.f32 %v1012_v57, %v2098_v3  ;;  %v1024_v18 = vmul.f32 %v1020_v59, %v2092_v0 }
 0x3f0   :  { %v1090_v35 = vadd.f32 %v1086_v54, %v1082_v9  ;;  %v1077_v40 = vadd.f32 %v1061_v55, %v1053_v51  ;;  %v1081_v56 = vadd.f32 %v1069_v42, %v1065_v28  ;;  %v1032_v32 = vmul.f32 %v1028_v63, %v2096_v2 }
 0x3f1   :  { %v1040_v39 = vmul.f32 %v1036_v23, %v2123_v17  ;;  %v1048_v34 = vmul.f32 %v1044_v24, %v2848_v37  ;;  %v1056_v29 = vmul.f32 %v1052_v30, %v2849_v26  ;;  %v1064_v22 = vmul.f32 %v1060_v27, %v2850_v36 }
 0x3f2   :  { %1099 = vrot.lane.b32.xlu1 %v1090_v35, %s1869_s5  ;;  %v1085_v47 = vadd.f32 %v1077_v40, %v1073_v50  ;;  %v1068_v49 = vadd.f32 %v1016_v5, %v1008_v21  ;;  %v1072_v6 = vadd.f32 %v1032_v32, %v1024_v18  ;;  %v1007_v48 = vmul.f32 %v1004_v41, %v2080_v58 }
 0x3f3   :  { %v1076_v54 = vadd.f32 %v1048_v34, %v1040_v39  ;;  %v1080_v51 = vadd.f32 %v1064_v22, %v1056_v29  ;;  %v1015_v9 = vmul.f32 %v1012_v57, %v2084_v60  ;;  %v1023_v55 = vmul.f32 %v1020_v59, %v2088_v62 }
 0x3f4   :  { %v1089_v28 = vadd.f32 %v1085_v47, %v1081_v56  ;;  %v1084_v42 = vadd.f32 %v1072_v6, %v1068_v49  ;;  %v1031_v37 = vmul.f32 %v1028_v63, %v2104_v7  ;;  %v1039_v26 = vmul.f32 %v1036_v23, %v2100_v4 }
 0x3f5   :  { %v1088_v36 = vadd.f32 %v1080_v51, %v1076_v54  ;;  %v1047_v35 = vmul.f32 %v1044_v24, %v2106_v8  ;;  %v1055_v50 = vmul.f32 %v1052_v30, %v2147_v33  ;;  %v1063_v32 = vmul.f32 %v1060_v27, %v2169_v53 }
 0x3f6   :  { %1097 = vrot.lane.b32.xlu0 %v1089_v28, %s1869_s5  ;;  %v1067_v41 = vadd.f32 %v1015_v9, %v1007_v48  ;;  %v1071_v39 = vadd.f32 %v1031_v37, %v1023_v55 }
 0x3f7   :  { %v1092_v57 = vadd.f32 %v1088_v36, %v1084_v42  ;;  %v1075_v29 = vadd.f32 %v1047_v35, %v1039_v26  ;;  %v1079_v59 = vadd.f32 %v1063_v32, %v1055_v50 }
 0x3f8   :  { %v1083_v21 = vadd.f32 %v1071_v39, %v1067_v41 }
 0x3f9   :  { %1103 = vrot.lane.b32.xlu1 %v1092_v57, %s1869_s5  ;;  %v1087_v63 = vadd.f32 %v1079_v59, %v1075_v29 }
 0x3fb   :  { %v1091_v5 = vadd.f32 %v1087_v63, %v1083_v21 }
 0x3fd   :  { %1101 = vrot.lane.b32.xlu0 %v1091_v5, %s1869_s5 }
 0x401   :  { %1133 = vrot.lane.b32.xlu0 %v2451_v45, %s1869_s5 }
 0x464   :  { %v1100_v23 = vpop.permute.xlu1 %1099 }
 0x465   :  { %v1110_v24 = vadd.f32 %v1100_v23, %v2182_v43 }
 0x467   :  { %v1504_v30 = vmul.f32 -1.442695, %v1110_v24 }
 0x468   :  { %v1098_v27 = vpop.permute.xlu0 %1097 }
 0x469   :  { %1743 = vpow2.f32 %v1504_v30  ;;  %v1109_v37 = vadd.f32 %v1098_v27, %v2186_v44  ;;  %v2852_v27 = vld [vmem:[#allocation11_spill] sm:$0xff] }
 0x46b   :  { %v1503_v18 = vmul.f32 -1.442695, %v1109_v37  ;;  %v1104_v40 = vpop.permute.xlu1 %1103 }
 0x46c   :  { %v1112_v56 = vadd.f32 %v1104_v40, %v2199_v31 }
 0x46d   :  { %1745 = vpow2.f32 %v1503_v18  ;;  %v2853_v18 = vld [vmem:[#allocation23_spill] sm:$0xff] }
 0x46e   :  { %v1505_v36 = vmul.f32 -1.442695, %v1112_v56  ;;  %v2854_v56 = vld [vmem:[#allocation14_spill] sm:$0xff] }
 0x46f   :  { %v1102_v34 = vpop.permute.xlu0 %1101 }
 0x470   :  { %v1111_v47 = vadd.f32 %v1102_v34, %v2202_v38 }
 0x473   :  { %v1744_v26 = vpop.eup %1743  ;;  %v1134_v54 = vpop.permute.xlu0 %1133 }
 0x474   :  { %v1123_v22 = vadd.f32 1.0, %v1744_v26  ;;  %v2855_v26 = vld [vmem:[#allocation15_spill] sm:$0xff] }
 0x476   :  { %1747 = vrcp.f32 %v1123_v22  ;;  %v2856_v22 = vld [vmem:[#allocation21_spill] sm:$0xff] }
 0x477   :  { %v1746_v45 = vpop.eup %1745  ;;  %1749 = vpow2.f32 %v1505_v36 }
 0x478   :  { %v1122_v49 = vadd.f32 1.0, %v1746_v45  ;;  %1751 = vtanh.f32 %v1111_v47  ;;  %v2857_v45 = vld [vmem:[#allocation20_spill] sm:$0xff] }
 0x47a   :  { %1753 = vrcp.f32 %v1122_v49 }
 0x480   :  { %v1748_v6 = vpop.eup %1747 }
 0x481   :  { %v1750_v48 = vpop.eup %1749  ;;  %v1136_v9 = vmul.f32 %v1748_v6, %v1134_v54  ;;  %v2858_v54 = vld [vmem:[#allocation22_spill] sm:$0xff] }
 0x482   :  { %v1752_v51 = vpop.eup %1751  ;;  %v1124_v28 = vadd.f32 1.0, %v1750_v48 }
 0x484   :  { %v1754_v55 = vpop.eup %1753  ;;  %1755 = vrcp.f32 %v1124_v28 }
 0x485   :  { %v1137_v42 = vmul.f32 %v1754_v55, %v1752_v51 }
 0x487   :  { %v2514_v35 = vadd.f32 %v1137_v42, %v1136_v9 }
 0x489   :  { %1757 = vtanh.f32 %v2514_v35 }
 0x48e   :  { %v1756_v50 = vpop.eup %1755 }
 0x493   :  { %v1758_v32 = vpop.eup %1757 }
 0x494   :  { %v2517_v41 = vmul.f32 %v1758_v32, %v1756_v50 }
 0x496   :  { %2851 = vst [vmem:[#allocation27_spill] sm:$0xff] %v2517_v41  ;;  %v1150_v39 = vrot.slane %v2517_v41, %v2127_v19  ;;  %v1158_v57 = vrot.slane %v2517_v41, %v2110_v11  ;;  %v1166_v29 = vrot.slane %v2517_v41, %v2108_v10  ;;  %v1174_v59 = vrot.slane %v2517_v41, %v2129_v20 }
 0x497   :  { %v1182_v21 = vrot.slane %v2517_v41, %v2119_v15  ;;  %v1190_v63 = vrot.slane %v2517_v41, %v2115_v13  ;;  %v1198_v5 = vrot.slane %v2517_v41, %v2117_v14  ;;  %v1206_v23 = vrot.slane %v2517_v41, %v2121_v16  ;;  %v2859_v41 = vld [vmem:[#allocation13_spill] sm:$0xff] }
 0x498   :  { %v1152_v24 = vmul.f32 %v1150_v39, %v2086_v61  ;;  %v1160_v30 = vmul.f32 %v1158_v57, %v2792_v25  ;;  %v1168_v37 = vmul.f32 %v1166_v29, %v2852_v27  ;;  %v1176_v40 = vmul.f32 %v1174_v59, %v2853_v18 }
 0x499   :  { %v1184_v34 = vmul.f32 %v1182_v21, %v2854_v56  ;;  %v1192_v36 = vmul.f32 %v1190_v63, %v2855_v26  ;;  %v1200_v47 = vmul.f32 %v1198_v5, %v2856_v22  ;;  %v1208_v49 = vmul.f32 %v1206_v23, %v2857_v45  ;;  %v2860_v26 = vld [vmem:[#allocation19_spill] sm:$0xff]  ;;  %v2861_v22 = vld [vmem:[#allocation16_spill] sm:$0xff] }
 0x49a   :  { %v1212_v6 = vadd.f32 %v1160_v30, %v1152_v24  ;;  %v1216_v48 = vadd.f32 %v1176_v40, %v1168_v37  ;;  %v1151_v51 = vmul.f32 %v1150_v39, %v2858_v54  ;;  %v1159_v9 = vmul.f32 %v1158_v57, %v2782_v12  ;;  %v2862_v24 = vld [vmem:[#allocation18_spill] sm:$0xff] }
 0x49b   :  { %v1220_v55 = vadd.f32 %v1192_v36, %v1184_v34  ;;  %v1224_v28 = vadd.f32 %v1208_v49, %v1200_v47  ;;  %v1167_v42 = vmul.f32 %v1166_v29, %v2783_v52  ;;  %v1175_v50 = vmul.f32 %v1174_v59, %v2784_v46 }
 0x49c   :  { %v1228_v32 = vadd.f32 %v1216_v48, %v1212_v6  ;;  %v1183_v56 = vmul.f32 %v1182_v21, %v2859_v41  ;;  %v1191_v18 = vmul.f32 %v1190_v63, %v2860_v26  ;;  %v1199_v27 = vmul.f32 %v1198_v5, %v2861_v22  ;;  %v2863_v22 = vld [vmem:[#allocation24_spill] sm:$0xff] }
 0x49d   :  { %v1232_v45 = vadd.f32 %v1224_v28, %v1220_v55  ;;  %v1207_v30 = vmul.f32 %v1206_v23, %v2862_v24  ;;  %v1211_v37 = vadd.f32 %v1159_v9, %v1151_v51  ;;  %v1215_v40 = vadd.f32 %v1175_v50, %v1167_v42  ;;  %v2864_v28 = vld [vmem:[#allocation25_spill] sm:$0xff]  ;;  %v2865_v51 = vld [vmem:[#allocation26_spill] sm:$0xff] }
 0x49e   :  { %v1219_v54 = vadd.f32 %v1191_v18, %v1183_v56  ;;  %v1154_v34 = vmul.f32 %v1150_v39, %v2094_v1  ;;  %v1162_v36 = vmul.f32 %v1158_v57, %v2098_v3  ;;  %v1170_v47 = vmul.f32 %v1166_v29, %v2092_v0 }
 0x49f   :  { %v1236_v49 = vadd.f32 %v1232_v45, %v1228_v32  ;;  %v1223_v6 = vadd.f32 %v1207_v30, %v1199_v27  ;;  %v1227_v48 = vadd.f32 %v1215_v40, %v1211_v37  ;;  %v1178_v41 = vmul.f32 %v1174_v59, %v2096_v2 }
 0x4a0   :  { %v1186_v26 = vmul.f32 %v1182_v21, %v2123_v17  ;;  %v1194_v55 = vmul.f32 %v1190_v63, %v2863_v22  ;;  %v1202_v24 = vmul.f32 %v1198_v5, %v2864_v28  ;;  %v1210_v9 = vmul.f32 %v1206_v23, %v2865_v51 }
 0x4a1   :  { %1245 = vrot.lane.b32.xlu0 %v1236_v49, %s1869_s5  ;;  %v1231_v18 = vadd.f32 %v1223_v6, %v1219_v54  ;;  %v1214_v56 = vadd.f32 %v1162_v36, %v1154_v34  ;;  %v1218_v42 = vadd.f32 %v1178_v41, %v1170_v47  ;;  %v1153_v50 = vmul.f32 %v1150_v39, %v2080_v58 }
 0x4a2   :  { %v1222_v45 = vadd.f32 %v1194_v55, %v1186_v26  ;;  %v1226_v27 = vadd.f32 %v1210_v9, %v1202_v24  ;;  %v1161_v32 = vmul.f32 %v1158_v57, %v2084_v60  ;;  %v1169_v30 = vmul.f32 %v1166_v29, %v2088_v62 }
 0x4a3   :  { %v1235_v37 = vadd.f32 %v1231_v18, %v1227_v48  ;;  %v1230_v40 = vadd.f32 %v1218_v42, %v1214_v56  ;;  %v1177_v22 = vmul.f32 %v1174_v59, %v2104_v7  ;;  %v1185_v28 = vmul.f32 %v1182_v21, %v2100_v4 }
 0x4a4   :  { %v1234_v51 = vadd.f32 %v1226_v27, %v1222_v45  ;;  %v1193_v49 = vmul.f32 %v1190_v63, %v2106_v8  ;;  %v1201_v54 = vmul.f32 %v1198_v5, %v2147_v33  ;;  %v1209_v41 = vmul.f32 %v1206_v23, %v2169_v53 }
 0x4a5   :  { %1243 = vrot.lane.b32.xlu1 %v1235_v37, %s1869_s5  ;;  %v1213_v39 = vadd.f32 %v1161_v32, %v1153_v50  ;;  %v1217_v26 = vadd.f32 %v1177_v22, %v1169_v30 }
 0x4a6   :  { %v1238_v57 = vadd.f32 %v1234_v51, %v1230_v40  ;;  %v1221_v24 = vadd.f32 %v1193_v49, %v1185_v28  ;;  %v1225_v29 = vadd.f32 %v1209_v41, %v1201_v54 }
 0x4a7   :  { %v1229_v34 = vadd.f32 %v1217_v26, %v1213_v39 }
 0x4a8   :  { %1249 = vrot.lane.b32.xlu0 %v1238_v57, %s1869_s5  ;;  %v1233_v59 = vadd.f32 %v1225_v29, %v1221_v24 }
 0x4aa   :  { %v1237_v36 = vadd.f32 %v1233_v59, %v1229_v34 }
 0x4ac   :  { %1247 = vrot.lane.b32.xlu1 %v1237_v36, %s1869_s5 }
 0x4b0   :  { %1279 = vrot.lane.b32.xlu1 %v2514_v35, %s1869_s5 }
 0x513   :  { %v1246_v21 = vpop.permute.xlu0 %1245 }
 0x514   :  { %v1256_v63 = vadd.f32 %v1246_v21, %v2182_v43 }
 0x516   :  { %v1507_v5 = vmul.f32 -1.442695, %v1256_v63 }
 0x517   :  { %v1244_v23 = vpop.permute.xlu1 %1243 }
 0x518   :  { %1759 = vpow2.f32 %v1507_v5  ;;  %v1255_v22 = vadd.f32 %v1244_v23, %v2186_v44  ;;  %v2867_v5 = vld [vmem:[#allocation23_spill] sm:$0xff]  ;;  %v2868_v23 = vld [vmem:[#allocation14_spill] sm:$0xff] }
 0x51a   :  { %v1506_v47 = vmul.f32 -1.442695, %v1255_v22  ;;  %v1250_v6 = vpop.permute.xlu0 %1249 }
 0x51b   :  { %v1258_v48 = vadd.f32 %v1250_v6, %v2199_v31  ;;  %v2870_v6 = vld [vmem:[#allocation21_spill] sm:$0xff] }
 0x51c   :  { %1761 = vpow2.f32 %v1506_v47 }
 0x51d   :  { %v1508_v51 = vmul.f32 -1.442695, %v1258_v48  ;;  %v2871_v48 = vld [vmem:[#allocation20_spill] sm:$0xff] }
 0x51e   :  { %v1248_v55 = vpop.permute.xlu1 %1247 }
 0x51f   :  { %v1257_v18 = vadd.f32 %v1248_v55, %v2202_v38 }
 0x522   :  { %v1760_v28 = vpop.eup %1759  ;;  %v1280_v45 = vpop.permute.xlu1 %1279 }
 0x523   :  { %v1269_v9 = vadd.f32 1.0, %v1760_v28 }
 0x525   :  { %1763 = vrcp.f32 %v1269_v9 }
 0x526   :  { %v1762_v35 = vpop.eup %1761  ;;  %1765 = vpow2.f32 %v1508_v51  ;;  %v2872_v51 = vld [vmem:[#allocation22_spill] sm:$0xff] }
 0x527   :  { %v1268_v56 = vadd.f32 1.0, %v1762_v35  ;;  %1767 = vtanh.f32 %v1257_v18 }
 0x529   :  { %1769 = vrcp.f32 %v1268_v56 }
 0x52f   :  { %v1764_v42 = vpop.eup %1763 }
 0x530   :  { %v1766_v50 = vpop.eup %1765  ;;  %v1282_v32 = vmul.f32 %v1764_v42, %v1280_v45  ;;  %v2873_v42 = vld [vmem:[#allocation13_spill] sm:$0xff]  ;;  %v2874_v45 = vld [vmem:[#allocation19_spill] sm:$0xff] }
 0x531   :  { %v1768_v27 = vpop.eup %1767  ;;  %v1270_v37 = vadd.f32 1.0, %v1766_v50 }
 0x533   :  { %v1770_v30 = vpop.eup %1769  ;;  %1771 = vrcp.f32 %v1270_v37 }
 0x534   :  { %v1283_v40 = vmul.f32 %v1770_v30, %v1768_v27 }
 0x536   :  { %v2577_v49 = vadd.f32 %v1283_v40, %v1282_v32  ;;  %v2875_v32 = vld [vmem:[#allocation16_spill] sm:$0xff]  ;;  %v2876_v40 = vld [vmem:[#allocation18_spill] sm:$0xff] }
 0x538   :  { %1773 = vtanh.f32 %v2577_v49 }
 0x53d   :  { %v1772_v54 = vpop.eup %1771 }
 0x542   :  { %v1774_v41 = vpop.eup %1773 }
 0x543   :  { %v2580_v39 = vmul.f32 %v1774_v41, %v1772_v54 }
 0x545   :  { %v1296_v26 = vrot.slane %v2580_v39, %v2127_v19  ;;  %v1304_v57 = vrot.slane %v2580_v39, %v2110_v11  ;;  %v1312_v24 = vrot.slane %v2580_v39, %v2108_v10  ;;  %v1320_v29 = vrot.slane %v2580_v39, %v2129_v20  ;;  %v2866_v10 = vld [vmem:[#allocation11_spill] sm:$0xff] }
 0x546   :  { %v1328_v34 = vrot.slane %v2580_v39, %v2119_v15  ;;  %v1336_v59 = vrot.slane %v2580_v39, %v2115_v13  ;;  %v1344_v36 = vrot.slane %v2580_v39, %v2117_v14  ;;  %v1352_v19 = vrot.slane %v2580_v39, %v2121_v16  ;;  %v2869_v15 = vld [vmem:[#allocation15_spill] sm:$0xff] }
 0x547   :  { %v1298_v11 = vmul.f32 %v1296_v26, %v2086_v61  ;;  %v1306_v21 = vmul.f32 %v1304_v57, %v2792_v25  ;;  %v1314_v63 = vmul.f32 %v1312_v24, %v2866_v10  ;;  %v1322_v20 = vmul.f32 %v1320_v29, %v2867_v5 }
 0x548   :  { %v1330_v22 = vmul.f32 %v1328_v34, %v2868_v23  ;;  %v1338_v47 = vmul.f32 %v1336_v59, %v2869_v15  ;;  %v1346_v13 = vmul.f32 %v1344_v36, %v2870_v6  ;;  %v1354_v55 = vmul.f32 %v1352_v19, %v2871_v48 }
 0x549   :  { %v1358_v14 = vadd.f32 %v1306_v21, %v1298_v11  ;;  %v1362_v28 = vadd.f32 %v1322_v20, %v1314_v63  ;;  %v1297_v16 = vmul.f32 %v1296_v26, %v2872_v51  ;;  %v1305_v61 = vmul.f32 %v1304_v57, %v2782_v12 }
 0x54a   :  { %v1366_v9 = vadd.f32 %v1338_v47, %v1330_v22  ;;  %v1370_v25 = vadd.f32 %v1354_v55, %v1346_v13  ;;  %v1313_v18 = vmul.f32 %v1312_v24, %v2783_v52  ;;  %v1321_v35 = vmul.f32 %v1320_v29, %v2784_v46  ;;  %v2877_v22 = vld [vmem:[#allocation24_spill] sm:$0xff]  ;;  %v2878_v47 = vld [vmem:[#allocation25_spill] sm:$0xff]  ;;  %v2879_v13 = vld [vmem:[#allocation26_spill] sm:$0xff] }
 0x54b   :  { %v1374_v56 = vadd.f32 %v1362_v28, %v1358_v14  ;;  %v1329_v50 = vmul.f32 %v1328_v34, %v2873_v42  ;;  %v1337_v27 = vmul.f32 %v1336_v59, %v2874_v45  ;;  %v1345_v30 = vmul.f32 %v1344_v36, %v2875_v32 }
 0x54c   :  { %v1378_v37 = vadd.f32 %v1370_v25, %v1366_v9  ;;  %v1353_v54 = vmul.f32 %v1352_v19, %v2876_v40  ;;  %v1357_v41 = vadd.f32 %v1305_v61, %v1297_v16  ;;  %v1361_v11 = vadd.f32 %v1321_v35, %v1313_v18 }
 0x54d   :  { %v1365_v21 = vadd.f32 %v1337_v27, %v1329_v50  ;;  %v1300_v12 = vmul.f32 %v1296_v26, %v2094_v1  ;;  %v1308_v10 = vmul.f32 %v1304_v57, %v2098_v3  ;;  %v1316_v52 = vmul.f32 %v1312_v24, %v2092_v0 }
 0x54e   :  { %v1382_v46 = vadd.f32 %v1378_v37, %v1374_v56  ;;  %v1369_v63 = vadd.f32 %v1353_v54, %v1345_v30  ;;  %v1373_v5 = vadd.f32 %v1361_v11, %v1357_v41  ;;  %v1324_v20 = vmul.f32 %v1320_v29, %v2096_v2 }
 0x54f   :  { %v1332_v23 = vmul.f32 %v1328_v34, %v2123_v17  ;;  %v1340_v15 = vmul.f32 %v1336_v59, %v2877_v22  ;;  %v1348_v6 = vmul.f32 %v1344_v36, %v2878_v47  ;;  %v1356_v48 = vmul.f32 %v1352_v19, %v2879_v13 }
 0x550   :  { %1391 = vrot.lane.b32.xlu1 %v1382_v46, %s1869_s5  ;;  %v1377_v1 = vadd.f32 %v1369_v63, %v1365_v21  ;;  %v1360_v55 = vadd.f32 %v1308_v10, %v1300_v12  ;;  %v1364_v3 = vadd.f32 %v1324_v20, %v1316_v52  ;;  %v1299_v0 = vmul.f32 %v1296_v26, %v2080_v58 }
 0x551   :  { %v1368_v14 = vadd.f32 %v1340_v15, %v1332_v23  ;;  %v1372_v28 = vadd.f32 %v1356_v48, %v1348_v6  ;;  %v1307_v51 = vmul.f32 %v1304_v57, %v2084_v60  ;;  %v1315_v2 = vmul.f32 %v1312_v24, %v2088_v62 }
 0x552   :  { %v1381_v17 = vadd.f32 %v1377_v1, %v1373_v5  ;;  %v1376_v16 = vadd.f32 %v1364_v3, %v1360_v55  ;;  %v1323_v61 = vmul.f32 %v1320_v29, %v2104_v7  ;;  %v1331_v9 = vmul.f32 %v1328_v34, %v2100_v4  ;;  %v2880_v4 = vld [vmem:[#allocation17_spill] sm:$0xff]  ;;  %v2884_v34 = vld [vmem:[#allocation27_spill] sm:$0xff] }
 0x553   :  { %v1380_v25 = vadd.f32 %v1372_v28, %v1368_v14  ;;  %v1339_v18 = vmul.f32 %v1336_v59, %v2106_v8  ;;  %v1347_v35 = vmul.f32 %v1344_v36, %v2147_v33  ;;  %v1355_v56 = vmul.f32 %v1352_v19, %v2169_v53  ;;  %v2881_v53 = vld [vmem:[#allocation10_spill] sm:$0xff]  ;;  %v2882_v8 = vld [vmem:[#allocation9_spill] sm:$0xff]  ;;  %v2883_v33 = vld [vmem:[#allocation12_spill] sm:$0xff] }
 0x554   :  { %1389 = vrot.lane.b32.xlu0 %v1381_v17, %s1869_s5  ;;  %v1359_v58 = vadd.f32 %v1307_v51, %v1299_v0  ;;  %v1363_v26 = vadd.f32 %v1323_v61, %v1315_v2 }
 0x555   :  { %v1384_v60 = vadd.f32 %v1380_v25, %v1376_v16  ;;  %v1367_v57 = vadd.f32 %v1339_v18, %v1331_v9  ;;  %v1371_v62 = vadd.f32 %v1355_v56, %v1347_v35 }
 0x556   :  { %v1375_v24 = vadd.f32 %v1363_v26, %v1359_v58 }
 0x557   :  { %1395 = vrot.lane.b32.xlu1 %v1384_v60, %s1869_s5  ;;  %v1379_v7 = vadd.f32 %v1371_v62, %v1367_v57 }
 0x559   :  { %v1383_v29 = vadd.f32 %v1379_v7, %v1375_v24 }
 0x55b   :  { %1393 = vrot.lane.b32.xlu0 %v1383_v29, %s1869_s5  ;;  %704 = vrot.lane.b32.xlu1 %v2880_v4, %s1870_s16 }
 0x55f   :  { %1425 = vrot.lane.b32.xlu0 %v2577_v49, %s1869_s5  ;;  %996 = vrot.lane.b32.xlu1 %v2881_v53, %s1871_s17 }
 0x563   :  { %558 = vrot.lane.b32.xlu0 %v2882_v8, %s1872_s18 }
 0x567   :  { %850 = vrot.lane.b32.xlu0 %v2883_v33, %s1873_s19 }
 0x56b   :  { %1142 = vrot.lane.b32.xlu0 %v2884_v34, %s1874_s20 }
 0x5c2   :  { %v1392_v59 = vpop.permute.xlu1 %1391 }
 0x5c3   :  { %v1402_v36 = vadd.f32 %v1392_v59, %v2182_v43 }
 0x5c5   :  { %v1510_v19 = vmul.f32 -1.442695, %v1402_v36 }
 0x5c6   :  { %v1390_v42 = vpop.permute.xlu0 %1389 }
 0x5c7   :  { %1775 = vpow2.f32 %v1510_v19  ;;  %v1401_v49 = vadd.f32 %v1390_v42, %v2186_v44 }
 0x5c9   :  { %v1509_v50 = vmul.f32 -1.442695, %v1401_v49  ;;  %v1396_v45 = vpop.permute.xlu1 %1395 }
 0x5ca   :  { %v1404_v27 = vadd.f32 %v1396_v45, %v2199_v31 }
 0x5cb   :  { %1777 = vpow2.f32 %v1509_v50 }
 0x5cc   :  { %v1511_v40 = vmul.f32 -1.442695, %v1404_v27 }
 0x5cd   :  { %v1394_v32 = vpop.permute.xlu0 %1393  ;;  %v705_v30 = vpop.permute.xlu1 %704 }
 0x5ce   :  { %708 = vst.msk [vmem:[#allocation2 + $0x10] sm:$0xff] %vm415_vm0, %v705_v30  ;;  %v1403_v43 = vadd.f32 %v1394_v32, %v2202_v38 }
 0x5d1   :  { %v1776_v37 = vpop.eup %1775  ;;  %v1426_v54 = vpop.permute.xlu0 %1425 }
 0x5d2   :  { %v997_v41 = vpop.permute.xlu1 %996  ;;  %v1415_v11 = vadd.f32 1.0, %v1776_v37 }
 0x5d3   :  { %1000 = vst.msk [vmem:[#allocation2 + $0x20] sm:$0xff] %vm415_vm0, %v997_v41 }
 0x5d4   :  { %1779 = vrcp.f32 %v1415_v11 }
 0x5d5   :  { %v1778_v44 = vpop.eup %1777  ;;  %1781 = vpow2.f32 %v1511_v40  ;;  %v559_v21 = vpop.permute.xlu0 %558 }
 0x5d6   :  { %v1414_v12 = vadd.f32 1.0, %v1778_v44  ;;  %562 = vst.msk [vmem:[#allocation2 + $0x8] sm:$0xff] %vm415_vm0, %v559_v21  ;;  %1783 = vtanh.f32 %v1403_v43 }
 0x5d8   :  { %1785 = vrcp.f32 %v1414_v12 }
 0x5d9   :  { %v851_v31 = vpop.permute.xlu0 %850 }
 0x5da   :  { %854 = vst.msk [vmem:[#allocation2 + $0x18] sm:$0xff] %vm415_vm0, %v851_v31 }
 0x5dd   :  { %v1143_v10 = vpop.permute.xlu0 %1142 }
 0x5de   :  { %v1780_v52 = vpop.eup %1779  ;;  %1146 = vst.msk [vmem:[#allocation2 + $0x28] sm:$0xff] %vm415_vm0, %v1143_v10 }
 0x5df   :  { %v1782_v46 = vpop.eup %1781  ;;  %v1428_v5 = vmul.f32 %v1780_v52, %v1426_v54 }
 0x5e0   :  { %v1784_v63 = vpop.eup %1783  ;;  %v1416_v20 = vadd.f32 1.0, %v1782_v46 }
 0x5e2   :  { %v1786_v38 = vpop.eup %1785  ;;  %1787 = vrcp.f32 %v1416_v20 }
 0x5e3   :  { %v1429_v23 = vmul.f32 %v1786_v38, %v1784_v63 }
 0x5e5   :  { %v1430_v22 = vadd.f32 %v1429_v23, %v1428_v5 }
 0x5e7   :  { %1789 = vtanh.f32 %v1430_v22  ;;  %1441 = vrot.lane.b32.xlu0 %v1430_v22, %s1875_s21 }
 0x5ec   :  { %v1788_v15 = vpop.eup %1787 }
 0x5f1   :  { %v1790_v47 = vpop.eup %1789 }
 0x5f2   :  { %v1432_v6 = vmul.f32 %v1790_v47, %v1788_v15 }
 0x5f4   :  { %1434 = vrot.lane.b32.xlu1 %v1432_v6, %s1875_s21 }
 0x5f8   :  { %1288 = vrot.lane.b32.xlu1 %v2580_v39, %s1876_s22 }
 0x659   :  { %v1442_v13 = vpop.permute.xlu0 %1441 }
 0x65a   :  { %1444 = vst.msk [vmem:[#allocation6] sm:$0xff] %vm415_vm0, %v1442_v13 }
 0x666   :  { %v1435_v48 = vpop.permute.xlu1 %1434 }
 0x667   :  { %1438 = vst.msk [vmem:[#allocation2 + $0x38] sm:$0xff] %vm415_vm0, %v1435_v48  ;;  %1439 = vst.msk [vmem:[#allocation4] sm:$0xff] %vm415_vm0, %v1435_v48 }
 0x668   :  { %1802 = shalt.err (!%p1799_p4)
}
 0x669   :  { %s1803_s9 = scalar_lea.hbm %s2713_s7, 128 }
 0x66a   :  { %p1804_p5 = scmp.ne.s32.totalorder %s2713_s7, %s1803_s9  ;;  %p1807_p6 = scmp.lt.u32.totalorder %s1803_s9, %s2713_s7 }
 0x66c   :  { %p1809_p7 = pnand %p1807_p6, %p1804_p5 }
 0x66e   :  { %1812 = shalt.err (!%p1809_p7)
}
 0x66f   :  { %1466 = dma.vmem_to_hbm [thread:$0]  %s1464_s24, 128, %s2713_s7, [#allocation5]  }
 0x670   :  { %s1813_s3 = scalar_lea.vmem %s2652_s26, 128  ;;  %p1818_p9 = scmp.lt.s32.totalorder %s2652_s26, %s2652_s26 }
 0x671   :  { %p1814_p8 = scmp.ne.s32.totalorder %s2652_s26, %s1813_s3  ;;  %p1819_p10 = scmp.lt.s32.totalorder %s1813_s3, %s1813_s3 }
 0x673   :  { %p1820_p11 = por %p1819_p10, %p1818_p9 }
 0x675   :  { %p1821_p12 = pnand %p1820_p11, %p1814_p8 }
 0x677   :  { %1824 = shalt.err (!%p1821_p12)
}
 0x678   :  { %s1825_s15 = scalar_lea.hbm %s2714_s8, 128 }
 0x679   :  { %p1826_p13 = scmp.ne.s32.totalorder %s2714_s8, %s1825_s15  ;;  %p1829_p0 = scmp.lt.u32.totalorder %s1825_s15, %s2714_s8 }
 0x67b   :  { %p1831_p1 = pnand %p1829_p0, %p1826_p13 }
 0x67d   :  { %1834 = shalt.err (!%p1831_p1)
}
 0x67e   :  { %1476 = dma.vmem_to_hbm [thread:$0]  %s2652_s26, 128, %s2714_s8, [#allocation5]   ;;  %v1289_v39 = vpop.permute.xlu1 %1288 }
 0x67f   :  { %1292 = vst.msk [vmem:[#allocation2 + $0x30] sm:$0xff] %vm415_vm0, %v1289_v39  ;;  %s1835_s21 = scalar_lea.vmem %s2656_s27, 1024  ;;  %p1840_p3 = scmp.lt.s32.totalorder %s2656_s27, %s2656_s27 }
 0x680   :  { %p1836_p2 = scmp.ne.s32.totalorder %s2656_s27, %s1835_s21  ;;  %p1841_p4 = scmp.lt.s32.totalorder %s1835_s21, %s1835_s21 }
 0x682   :  { %p1842_p5 = por %p1841_p4, %p1840_p3 }
 0x684   :  { %p1843_p6 = pnand %p1842_p5, %p1836_p2 }
 0x686   :  { %1846 = shalt.err (!%p1843_p6)
}
 0x687   :  { %s1847_s24 = scalar_lea.hbm %s2712_s6, 1024 }
 0x688   :  { %p1848_p7 = scmp.ne.s32.totalorder %s2712_s6, %s1847_s24  ;;  %p1851_p8 = scmp.lt.u32.totalorder %s1847_s24, %s2712_s6 }
 0x68a   :  { %p1853_p9 = pnand %p1851_p8, %p1848_p7 }
 0x68c   :  { %1856 = shalt.err (!%p1853_p9)
}
 0x68d   :  { %s1880_s28 = smov 128  }
 0x68e   :  { %1456 = dma.vmem_to_hbm [thread:$0]  %s2656_s27, 1024, %s2712_s6, [#allocation3], %s1880_s28, %s1880_s28, %s1869_s5  }
 0x68f   :  { %1857 = dma.done.wait [#allocation3], 1024  }
 0x690   :  { %1858 = vsyncadd [#allocation3], 4294966272 }
 0x691   :  { %1859 = dma.done.wait [#allocation5], 256  }
 0x692   :  { %1860 = vsyncadd [#allocation5], 4294967040 }
 0x693   :  { %1486 = vsyncpa [#allocation3], 1 }
 0x694   :  { %1487 = vsyncpa [#allocation5], 1 }

</bundles_post_ra>
